<compile_context>
chip_gen: v6e
topology: v6e:2x2x1
jax: 0.10.0
libtpu: 0.0.40
codegen_flags: <defaults>
</compile_context>

<pallas_src>
import functools

import jax
import jax.numpy as jnp
from jax.experimental import pallas as pl
from jax.experimental.pallas import tpu as pltpu

EPS = 1e-5  # PyTorch LayerNorm default eps


# ----------------------------- kernel helpers ------------------------------
def _layer_norm(x, gamma, beta):
    mean = jnp.mean(x, axis=-1, keepdims=True)
    var = jnp.mean((x - mean) ** 2, axis=-1, keepdims=True)
    return (x - mean) * jax.lax.rsqrt(var + EPS) * gamma + beta


def _gelu_exact(x):
    # nn.GELU default: exact erf-based GELU
    return 0.5 * x * (1.0 + jax.lax.erf(x * jnp.float32(0.7071067811865476)))


# ------------------------------ Pallas kernel ------------------------------
def encoder_layer_kernel(x_ref,
                         ln1_g_ref, ln1_b_ref,
                         wqkv_ref, bqkv_ref,
                         wo_ref, bo_ref,
                         ln2_g_ref, ln2_b_ref,
                         w1_ref, b1_ref,
                         lnm1_g_ref, lnm1_b_ref,
                         w2_ref, b2_ref,
                         lnm2_g_ref, lnm2_b_ref,
                         o_ref,
                         q_scr, ctx_scr,
                         *, n_head, q_tile):
    mm = wqkv_ref.dtype                                   # MXU compute dtype (bf16)

    x = x_ref[0].astype(jnp.float32)                      # [N, C]
    N, C = x.shape
    dh = C // n_head
    num_q_tiles = N // q_tile

    # ---------------- self-attention block (pre-LN) ----------------
    h1 = _layer_norm(x, ln1_g_ref[0], ln1_b_ref[0]).astype(mm)
    # Fused qkv projection; 1/sqrt(dh) is pre-folded into the Q weight/bias cols.
    qkv = jnp.dot(h1, wqkv_ref[...],
                  preferred_element_type=jnp.float32) + bqkv_ref[0]      # [N, 3C]
    q_scr[...] = qkv[:, :C]                                              # scaled q
    kh = (qkv[:, C:2 * C].reshape(N, n_head, dh)
          .transpose(1, 0, 2).astype(mm))                                # [h, N, dh]
    vh = (qkv[:, 2 * C:].reshape(N, n_head, dh)
          .transpose(1, 0, 2).astype(mm))                                # [h, N, dh]

    # Flash-style query tiling: only an [h, q_tile, N] score block is ever
    # materialized.  Full K/V is resident, so softmax per tile is exact.
    @pl.loop(0, num_q_tiles)
    def _(t):
        r0 = t * q_tile
        if q_tile % 8 == 0:
            r0 = pl.multiple_of(r0, 8)
        qt = q_scr[pl.ds(r0, q_tile), :]                                 # [tq, C]
        qt = (qt.reshape(q_tile, n_head, dh)
              .transpose(1, 0, 2).astype(mm))                            # [h, tq, dh]
        s = jnp.einsum("hnd,hmd->hnm", qt, kh,
                       preferred_element_type=jnp.float32)               # [h, tq, N]
        s = s - jnp.max(s, axis=-1, keepdims=True)
        p = jnp.exp(s)
        p = p * pl.reciprocal(jnp.sum(p, axis=-1, keepdims=True), approx=True)
        ctx = jnp.einsum("hnm,hmd->hnd", p.astype(mm), vh,
                         preferred_element_type=jnp.float32)             # [h, tq, dh]
        ctx_scr[pl.ds(r0, q_tile), :] = ctx.transpose(1, 0, 2).reshape(q_tile, C)

    attn = jnp.dot(ctx_scr[...].astype(mm), wo_ref[...],
                   preferred_element_type=jnp.float32) + bo_ref[0]
    x = x + attn                      # residual (dropout / drop_path = identity)

    # ---------------------- MLP block (pre-LN) ----------------------
    h2 = _layer_norm(x, ln2_g_ref[0], ln2_b_ref[0])
    h2 = jnp.dot(h2.astype(mm), w1_ref[...],
                 preferred_element_type=jnp.float32) + b1_ref[0]
    h2 = _layer_norm(h2, lnm1_g_ref[0], lnm1_b_ref[0])
    h2 = _gelu_exact(h2)
    h2 = jnp.dot(h2.astype(mm), w2_ref[...],
                 preferred_element_type=jnp.float32) + b2_ref[0]
    h2 = _layer_norm(h2, lnm2_g_ref[0], lnm2_b_ref[0])
    o_ref[0] = (x + h2).astype(o_ref.dtype)               # residual


# --------------------------- one-time weight prep ---------------------------
def prepare_encoder_params(p, n_head, matmul_dtype=jnp.bfloat16):
    """Hoisted per-layer weight prep: (in,out) layout, bf16 cast, fused qkv,
    1/sqrt(dh) folded into the Q projection."""
    C = p["wo"].shape[0]
    dh = C // n_head
    scale = 1.0 / (dh ** 0.5)
    col_scale = jnp.concatenate([jnp.full((C,), scale, jnp.float32),
                                 jnp.ones((2 * C,), jnp.float32)])
    wqkv_t = jnp.asarray(p["wqkv"]).T * col_scale[None, :]       # (C, 3C)
    return {
        "wqkv": wqkv_t.astype(matmul_dtype),
        "bqkv": (jnp.asarray(p["bqkv"]) * col_scale[None, :]).astype(jnp.float32),
        "wo": jnp.asarray(p["wo"]).T.astype(matmul_dtype),       # (C, C)
        "bo": p["bo"],
        "w1": jnp.asarray(p["w1"]).T.astype(matmul_dtype),       # (C, H)
        "b1": p["b1"],
        "w2": jnp.asarray(p["w2"]).T.astype(matmul_dtype),       # (H, C)
        "b2": p["b2"],
        "ln1_g": p["ln1_g"], "ln1_b": p["ln1_b"],
        "ln2_g": p["ln2_g"], "ln2_b": p["ln2_b"],
        "lnm1_g": p["lnm1_g"], "lnm1_b": p["lnm1_b"],
        "lnm2_g": p["lnm2_g"], "lnm2_b": p["lnm2_b"],
    }


# ------------------------------ layer wrapper ------------------------------
def _pick_q_tile(N, target=256):
    """Largest multiple-of-8 divisor of N that is <= target (or N itself)."""
    if N <= target:
        return N
    t = (target // 8) * 8
    while t >= 8:
        if N % t == 0:
            return t
        t -= 8
    return N


def _vmem_limit_bytes(N, C, H, n_head, q_tile, mm_bytes):
    f32 = 4
    weights = (4 * C * C + 2 * C * H) * mm_bytes          # wqkv+wo, w1+w2 (single-buffered)
    params = (9 * C + 3 * H) * f32                        # biases + LN params (rough)
    io = 2 * 2 * N * C * f32                              # double-buffered x / out blocks
    acts = (3 * N * C) * f32                              # fused qkv
    acts += 2 * N * C * f32                               # q / ctx scratches
    acts += 2 * N * C * mm_bytes                          # kh / vh
    acts += 2 * n_head * q_tile * N * f32                 # score + prob tile
    acts += 2 * N * H * f32                               # fc1 intermediate / GELU
    acts += 4 * N * C * f32                               # residual / LN temporaries
    est = weights + params + io + acts
    return int(est * 1.6) + (4 << 20)                     # Mosaic scratch + headroom


def _encoder_layer_call(x, prep, n_head, q_tile, single_buffer_weights):
    B, N, C = x.shape
    H = prep["w1"].shape[1]
    mm_dtype = prep["wqkv"].dtype
    mm_bytes = jnp.dtype(mm_dtype).itemsize

    def const(shape):
        if single_buffer_weights:
            # Grid-invariant operand: fetch once, no double-buffering.
            return pl.BlockSpec(shape, lambda b: (0, 0), pipeline_mode=pl.Buffered(1))
        return pl.BlockSpec(shape, lambda b: (0, 0))

    in_specs = [
        pl.BlockSpec((1, N, C), lambda b: (b, 0, 0)),   # x
        const((1, C)), const((1, C)),                   # ln1 gamma / beta
        const((C, 3 * C)), const((1, 3 * C)),           # fused qkv W / b (scale folded)
        const((C, C)), const((1, C)),                   # out-proj W / b
        const((1, C)), const((1, C)),                   # ln2 gamma / beta
        const((C, H)), const((1, H)),                   # fc1 W / b
        const((1, H)), const((1, H)),                   # mlp LN1 gamma / beta
        const((H, C)), const((1, C)),                   # fc2 W / b
        const((1, C)), const((1, C)),                   # mlp LN2 gamma / beta
    ]

    # Advisory cost estimate (lets XLA schedule around the custom call).
    flops = 2 * B * N * (4 * C * C + 2 * N * C + 2 * C * H)
    transcendentals = B * (n_head * N * N + N * H)
    bytes_accessed = (2 * B * N * C + 9 * C + 3 * H) * 4 + (4 * C * C + 2 * C * H) * mm_bytes

    try:
        cap = int(pltpu.get_tpu_info().vmem_capacity_bytes)
    except Exception:
        cap = 64 << 20                                   # assume v7x-sized VMEM if unknown
    vmem_limit = max(32 << 20,
                     min(_vmem_limit_bytes(N, C, H, n_head, q_tile, mm_bytes),
                         int(cap * 0.9), 100 << 20))

    fn = pl.pallas_call(
        functools.partial(encoder_layer_kernel, n_head=n_head, q_tile=q_tile),
        out_shape=jax.ShapeDtypeStruct((B, N, C), x.dtype),
        grid_spec=pltpu.PrefetchScalarGridSpec(
            num_scalar_prefetch=0,
            grid=(B,),
            in_specs=in_specs,
            out_specs=pl.BlockSpec((1, N, C), lambda b: (b, 0, 0)),
            scratch_shapes=[pltpu.VMEM((N, C), jnp.float32),    # scaled q
                            pltpu.VMEM((N, C), jnp.float32)]),  # merged attn ctx
        compiler_params=pltpu.CompilerParams(
            dimension_semantics=("parallel",),
            vmem_limit_bytes=int(vmem_limit)),
        cost_estimate=pl.CostEstimate(flops=int(flops),
                                      transcendentals=int(transcendentals),
                                      bytes_accessed=int(bytes_accessed)),
    )
    return fn(x,
              prep["ln1_g"], prep["ln1_b"],
              prep["wqkv"], prep["bqkv"],
              prep["wo"], prep["bo"],
              prep["ln2_g"], prep["ln2_b"],
              prep["w1"], prep["b1"],
              prep["lnm1_g"], prep["lnm1_b"],
              prep["w2"], prep["b2"],
              prep["lnm2_g"], prep["lnm2_b"])


def encoder_layer_pallas(x, prep, n_head, *, q_tile=None):
    B, N, C = x.shape
    assert C % n_head == 0, "feature_dim must be divisible by n_head"
    if q_tile is None:
        q_tile = _pick_q_tile(N)
    assert q_tile >= 1 and N % q_tile == 0, "q_tile must divide the sequence length"
    try:
        return _encoder_layer_call(x, prep, n_head, q_tile, True)
    except Exception:
        # Compatibility fallback: jax without BlockSpec(pipeline_mode=Buffered(1))
        # support -> default (double-buffered) weight specs.
        return _encoder_layer_call(x, prep, n_head, q_tile, False)


# --------------------------- pure-JAX reference ----------------------------
def encoder_layer_ref(x, p, n_head):
    B, N, C = x.shape
    dh = C // n_head
    scale = 1.0 / (dh ** 0.5)

    def ln(v, g, b):
        m = jnp.mean(v, axis=-1, keepdims=True)
        var = jnp.mean((v - m) ** 2, axis=-1, keepdims=True)
        return (v - m) * jax.lax.rsqrt(var + EPS) * g + b

    h = ln(x, p["ln1_g"][0], p["ln1_b"][0])
    qkv = h @ p["wqkv"].T + p["bqkv"][0]
    q, k, v = qkv[..., :C], qkv[..., C:2 * C], qkv[..., 2 * C:]
    q = q.reshape(B, N, n_head, dh).transpose(0, 2, 1, 3)
    k = k.reshape(B, N, n_head, dh).transpose(0, 2, 1, 3)
    v = v.reshape(B, N, n_head, dh).transpose(0, 2, 1, 3)
    s = jnp.einsum("bhnd,bhmd->bhnm", q, k) * scale
    pattn = jax.nn.softmax(s, axis=-1)
    a = jnp.einsum("bhnm,bhmd->bhnd", pattn, v).transpose(0, 2, 1, 3).reshape(B, N, C)
    a = a @ p["wo"].T + p["bo"][0]
    x = x + a
    h = ln(x, p["ln2_g"][0], p["ln2_b"][0])
    h = h @ p["w1"].T + p["b1"][0]
    h = ln(h, p["lnm1_g"][0], p["lnm1_b"][0])
    h = 0.5 * h * (1.0 + jax.lax.erf(h * 0.7071067811865476))
    h = h @ p["w2"].T + p["b2"][0]
    h = ln(h, p["lnm2_g"][0], p["lnm2_b"][0])
    return x + h


# ----------------------------- parameter init ------------------------------
def init_layer_params(key, C, H):
    ks = jax.random.split(key, 8)
    s_attn = 1.0 / (C ** 0.5)
    s_fc1 = 1.0 / (C ** 0.5)
    s_fc2 = 1.0 / (H ** 0.5)
    return {
        "ln1_g": jnp.ones((1, C), jnp.float32),
        "ln1_b": jnp.zeros((1, C), jnp.float32),
        "wqkv": jax.random.uniform(ks[0], (3 * C, C), jnp.float32, -s_attn, s_attn),
        "bqkv": jax.random.uniform(ks[1], (1, 3 * C), jnp.float32, -s_attn, s_attn),
        "wo": jax.random.uniform(ks[2], (C, C), jnp.float32, -s_attn, s_attn),
        "bo": jax.random.uniform(ks[3], (1, C), jnp.float32, -s_attn, s_attn),
        "ln2_g": jnp.ones((1, C), jnp.float32),
        "ln2_b": jnp.zeros((1, C), jnp.float32),
        "w1": jax.random.uniform(ks[4], (H, C), jnp.float32, -s_fc1, s_fc1),
        "b1": jax.random.uniform(ks[5], (1, H), jnp.float32, -s_fc1, s_fc1),
        "lnm1_g": jnp.ones((1, H), jnp.float32),
        "lnm1_b": jnp.zeros((1, H), jnp.float32),
        "w2": jax.random.uniform(ks[6], (C, H), jnp.float32, -s_fc2, s_fc2),
        "b2": jax.random.uniform(ks[7], (1, C), jnp.float32, -s_fc2, s_fc2),
        "lnm2_g": jnp.ones((1, C), jnp.float32),
        "lnm2_b": jnp.zeros((1, C), jnp.float32),
    }


# ---------------------------------- main -----------------------------------
if __name__ == "__main__":
    # Small shapes consistent with EncoderLayer(feature_dim=C, n_head): x is [B, N, C]
    B, N, C = 2, 8, 32
    N_HEAD = 4
    MLP_RATIO = 4
    H = C * MLP_RATIO

    key = jax.random.PRNGKey(0)
    kx, kp, kx2 = jax.random.split(key, 3)
    params = init_layer_params(kp, C, H)
    prep = prepare_encoder_params(params, N_HEAD)           # one-time weight prep

    # Test 1: default tiling (single query tile at this toy sequence length).
    x = jax.random.normal(kx, (B, N, C), jnp.float32)
    out = jax.block_until_ready(encoder_layer_pallas(x, prep, N_HEAD))
    ref = encoder_layer_ref(x, params, N_HEAD)
    assert out.shape == (B, N, C)
    err = float(jnp.max(jnp.abs(out - ref)))
    # bf16 matmul path + approx reciprocal vs f32 reference -> loosened tolerance.
    assert jnp.allclose(out, ref, rtol=5e-2, atol=5e-2), err

    # Test 2: exercise the multi-tile (flash-style) attention path: 2 query tiles.
    N2 = 16
    x2 = jax.random.normal(kx2, (B, N2, C), jnp.float32)
    out2 = jax.block_until_ready(encoder_layer_pallas(x2, prep, N_HEAD, q_tile=8))
    ref2 = encoder_layer_ref(x2, params, N_HEAD)
    err2 = float(jnp.max(jnp.abs(out2 - ref2)))
    assert jnp.allclose(out2, ref2, rtol=5e-2, atol=5e-2), err2

    print("KERNEL_OK")
</pallas_src>

<mosaic_0001>
module attributes {stable_mosaic.version = 11 : i64} {
  func.func @encoder_layer_kernel(%arg0: i32, %arg1: memref<1x8x32xf32, #tpu.memory_space<vmem>>, %arg2: memref<1x32xf32, #tpu.memory_space<vmem>>, %arg3: memref<1x32xf32, #tpu.memory_space<vmem>>, %arg4: memref<32x96xbf16, #tpu.memory_space<vmem>>, %arg5: memref<1x96xf32, #tpu.memory_space<vmem>>, %arg6: memref<32x32xbf16, #tpu.memory_space<vmem>>, %arg7: memref<1x32xf32, #tpu.memory_space<vmem>>, %arg8: memref<1x32xf32, #tpu.memory_space<vmem>>, %arg9: memref<1x32xf32, #tpu.memory_space<vmem>>, %arg10: memref<32x128xbf16, #tpu.memory_space<vmem>>, %arg11: memref<1x128xf32, #tpu.memory_space<vmem>>, %arg12: memref<1x128xf32, #tpu.memory_space<vmem>>, %arg13: memref<1x128xf32, #tpu.memory_space<vmem>>, %arg14: memref<128x32xbf16, #tpu.memory_space<vmem>>, %arg15: memref<1x32xf32, #tpu.memory_space<vmem>>, %arg16: memref<1x32xf32, #tpu.memory_space<vmem>>, %arg17: memref<1x32xf32, #tpu.memory_space<vmem>>, %arg18: memref<1x8x32xf32, #tpu.memory_space<vmem>>, %arg19: memref<8x32xf32, #tpu.memory_space<vmem>>, %arg20: memref<8x32xf32, #tpu.memory_space<vmem>>) attributes {dimension_semantics = [#tpu.dimension_semantics<parallel>], iteration_bounds = array<i64: 2>, scalar_prefetch = 0 : i64, scratch_operands = 2 : i64, tpu.core_type = #tpu.core_type<tc>, window_params = [{transform_indices = @transform_0, window_bounds = array<i64: 1, 8, 32>}, {pipeline_mode = #tpu.pipeline_mode<synchronous>, transform_indices = @transform_1, window_bounds = array<i64: 1, 32>}, {pipeline_mode = #tpu.pipeline_mode<synchronous>, transform_indices = @transform_2, window_bounds = array<i64: 1, 32>}, {pipeline_mode = #tpu.pipeline_mode<synchronous>, transform_indices = @transform_3, window_bounds = array<i64: 32, 96>}, {pipeline_mode = #tpu.pipeline_mode<synchronous>, transform_indices = @transform_4, window_bounds = array<i64: 1, 96>}, {pipeline_mode = #tpu.pipeline_mode<synchronous>, transform_indices = @transform_5, window_bounds = array<i64: 32, 32>}, {pipeline_mode = #tpu.pipeline_mode<synchronous>, transform_indices = @transform_6, window_bounds = array<i64: 1, 32>}, {pipeline_mode = #tpu.pipeline_mode<synchronous>, transform_indices = @transform_7, window_bounds = array<i64: 1, 32>}, {pipeline_mode = #tpu.pipeline_mode<synchronous>, transform_indices = @transform_8, window_bounds = array<i64: 1, 32>}, {pipeline_mode = #tpu.pipeline_mode<synchronous>, transform_indices = @transform_9, window_bounds = array<i64: 32, 128>}, {pipeline_mode = #tpu.pipeline_mode<synchronous>, transform_indices = @transform_10, window_bounds = array<i64: 1, 128>}, {pipeline_mode = #tpu.pipeline_mode<synchronous>, transform_indices = @transform_11, window_bounds = array<i64: 1, 128>}, {pipeline_mode = #tpu.pipeline_mode<synchronous>, transform_indices = @transform_12, window_bounds = array<i64: 1, 128>}, {pipeline_mode = #tpu.pipeline_mode<synchronous>, transform_indices = @transform_13, window_bounds = array<i64: 128, 32>}, {pipeline_mode = #tpu.pipeline_mode<synchronous>, transform_indices = @transform_14, window_bounds = array<i64: 1, 32>}, {pipeline_mode = #tpu.pipeline_mode<synchronous>, transform_indices = @transform_15, window_bounds = array<i64: 1, 32>}, {pipeline_mode = #tpu.pipeline_mode<synchronous>, transform_indices = @transform_16, window_bounds = array<i64: 1, 32>}, {transform_indices = @transform_17, window_bounds = array<i64: 1, 8, 32>}]} {
    %c0 = arith.constant 0 : index
    %c0_0 = arith.constant 0 : index
    %c0_1 = arith.constant 0 : index
    %0 = vector.load %arg1[%c0, %c0_0, %c0_1] : memref<1x8x32xf32, #tpu.memory_space<vmem>>, vector<1x8x32xf32>
    %1 = vector.shape_cast %0 : vector<1x8x32xf32> to vector<8x32xf32>
    %c0_2 = arith.constant 0 : index
    %c0_3 = arith.constant 0 : index
    %2 = vector.load %arg2[%c0_2, %c0_3] : memref<1x32xf32, #tpu.memory_space<vmem>>, vector<1x32xf32>
    %3 = vector.shape_cast %2 : vector<1x32xf32> to vector<32xf32>
    %c0_4 = arith.constant 0 : index
    %c0_5 = arith.constant 0 : index
    %4 = vector.load %arg3[%c0_4, %c0_5] : memref<1x32xf32, #tpu.memory_space<vmem>>, vector<1x32xf32>
    %5 = vector.shape_cast %4 : vector<1x32xf32> to vector<32xf32>
    %cst = arith.constant dense<0.000000e+00> : vector<8xf32>
    %6 = vector.multi_reduction <add>, %1, %cst [1] : vector<8x32xf32> to vector<8xf32>
    %7 = vector.shape_cast %6 : vector<8xf32> to vector<8x1xf32>
    %cst_6 = arith.constant 3.200000e+01 : f32
    %8 = vector.broadcast %cst_6 : f32 to vector<8x1xf32>
    %9 = arith.divf %7, %8 : vector<8x1xf32>
    %10 = vector.broadcast %9 : vector<8x1xf32> to vector<8x32xf32>
    %11 = arith.subf %1, %10 : vector<8x32xf32>
    %12 = arith.mulf %11, %11 : vector<8x32xf32>
    %cst_7 = arith.constant dense<0.000000e+00> : vector<8xf32>
    %13 = vector.multi_reduction <add>, %12, %cst_7 [1] : vector<8x32xf32> to vector<8xf32>
    %14 = vector.shape_cast %13 : vector<8xf32> to vector<8x1xf32>
    %cst_8 = arith.constant 3.200000e+01 : f32
    %15 = vector.broadcast %cst_8 : f32 to vector<8x1xf32>
    %16 = arith.divf %14, %15 : vector<8x1xf32>
    %17 = vector.broadcast %9 : vector<8x1xf32> to vector<8x32xf32>
    %18 = arith.subf %1, %17 : vector<8x32xf32>
    %cst_9 = arith.constant 9.99999974E-6 : f32
    %19 = vector.broadcast %cst_9 : f32 to vector<8x1xf32>
    %20 = arith.addf %16, %19 : vector<8x1xf32>
    %21 = math.rsqrt %20 : vector<8x1xf32>
    %22 = vector.broadcast %21 : vector<8x1xf32> to vector<8x32xf32>
    %23 = arith.mulf %18, %22 : vector<8x32xf32>
    %24 = vector.shape_cast %3 : vector<32xf32> to vector<1x32xf32>
    %25 = vector.broadcast %24 : vector<1x32xf32> to vector<8x32xf32>
    %26 = arith.mulf %23, %25 : vector<8x32xf32>
    %27 = vector.shape_cast %5 : vector<32xf32> to vector<1x32xf32>
    %28 = vector.broadcast %27 : vector<1x32xf32> to vector<8x32xf32>
    %29 = arith.addf %26, %28 : vector<8x32xf32>
    %30 = arith.truncf %29 : vector<8x32xf32> to vector<8x32xbf16>
    %c0_10 = arith.constant 0 : index
    %c0_11 = arith.constant 0 : index
    %31 = vector.load %arg4[%c0_10, %c0_11] : memref<32x96xbf16, #tpu.memory_space<vmem>>, vector<32x96xbf16>
    %cst_12 = arith.constant dense<0.000000e+00> : vector<8x96xf32>
    %32 = tpu.matmul %30, %31, %cst_12 {dimension_numbers = #tpu.dot_dimension_numbers<[1], [0], [0], [1], [0, 0, 1, 1], [], []>} : vector<8x32xbf16>, vector<32x96xbf16>, vector<8x96xf32> -> vector<8x96xf32>
    %c0_13 = arith.constant 0 : index
    %c0_14 = arith.constant 0 : index
    %33 = vector.load %arg5[%c0_13, %c0_14] : memref<1x96xf32, #tpu.memory_space<vmem>>, vector<1x96xf32>
    %34 = vector.shape_cast %33 : vector<1x96xf32> to vector<96xf32>
    %35 = vector.shape_cast %34 : vector<96xf32> to vector<1x96xf32>
    %36 = vector.broadcast %35 : vector<1x96xf32> to vector<8x96xf32>
    %37 = arith.addf %32, %36 : vector<8x96xf32>
    %38 = vector.extract_strided_slice %37 {offsets = [0, 0], sizes = [8, 32], strides = [1, 1]} : vector<8x96xf32> to vector<8x32xf32>
    %c0_15 = arith.constant 0 : index
    %c0_16 = arith.constant 0 : index
    %39 = vector.load %arg19[%c0_15, %c0_16] : memref<8x32xf32, #tpu.memory_space<vmem>>, vector<8x32xf32>
    tpu.vector_store %arg19[%c0_15, %c0_16], %38 {strides = array<i32>} : memref<8x32xf32, #tpu.memory_space<vmem>>, vector<8x32xf32>,
    %40 = vector.extract_strided_slice %37 {offsets = [0, 32], sizes = [8, 32], strides = [1, 1]} : vector<8x96xf32> to vector<8x32xf32>
    %41 = vector.shape_cast %40 : vector<8x32xf32> to vector<8x4x8xf32>
    %42 = tpu.transpose %41, [1, 0, 2] : vector<8x4x8xf32> -> vector<4x8x8xf32>
    %43 = arith.truncf %42 : vector<4x8x8xf32> to vector<4x8x8xbf16>
    %44 = vector.extract_strided_slice %37 {offsets = [0, 64], sizes = [8, 32], strides = [1, 1]} : vector<8x96xf32> to vector<8x32xf32>
    %45 = vector.shape_cast %44 : vector<8x32xf32> to vector<8x4x8xf32>
    %46 = tpu.transpose %45, [1, 0, 2] : vector<8x4x8xf32> -> vector<4x8x8xf32>
    %47 = arith.truncf %46 : vector<4x8x8xf32> to vector<4x8x8xbf16>
    %c0_i32 = arith.constant 0 : i32
    %c1_i32 = arith.constant 1 : i32
    %48 = arith.muli %c0_i32, %c1_i32 : i32
    %c0_i32_17 = arith.constant 0 : i32
    %49 = arith.addi %c0_i32_17, %48 : i32
    %c8_i32 = arith.constant 8 : i32
    %50 = arith.muli %49, %c8_i32 : i32
    %51 = tpu.assume_multiple %50, 8 : i32
    %52 = arith.index_cast %51 : i32 to index
    %c0_18 = arith.constant 0 : index
    %53 = vector.load %arg19[%52, %c0_18] : memref<8x32xf32, #tpu.memory_space<vmem>>, vector<8x32xf32>
    %54 = vector.shape_cast %53 : vector<8x32xf32> to vector<8x4x8xf32>
    %55 = tpu.transpose %54, [1, 0, 2] : vector<8x4x8xf32> -> vector<4x8x8xf32>
    %56 = arith.truncf %55 : vector<4x8x8xf32> to vector<4x8x8xbf16>
    "tpu.trace_start"() <{level = 10 : i32, message = "hnd,hmd->hnm"}> : () -> ()
    %cst_19 = arith.constant dense<0.000000e+00> : vector<4x8x8xf32>
    %57 = tpu.matmul %56, %43, %cst_19 {dimension_numbers = #tpu.dot_dimension_numbers<[2], [2], [1], [1], [0, 0, 0, 1, 1, 1], [0], [0]>} : vector<4x8x8xbf16>, vector<4x8x8xbf16>, vector<4x8x8xf32> -> vector<4x8x8xf32>
    "tpu.trace_stop"() : () -> ()
    %cst_20 = arith.constant dense<0xFF800000> : vector<4x8xf32>
    %58 = vector.multi_reduction <maximumf>, %57, %cst_20 [2] : vector<4x8x8xf32> to vector<4x8xf32>
    %59 = vector.shape_cast %58 : vector<4x8xf32> to vector<4x8x1xf32>
    %60 = vector.broadcast %59 : vector<4x8x1xf32> to vector<4x8x8xf32>
    %61 = arith.subf %57, %60 : vector<4x8x8xf32>
    %62 = math.exp %61 : vector<4x8x8xf32>
    %cst_21 = arith.constant dense<0.000000e+00> : vector<4x8xf32>
    %63 = vector.multi_reduction <add>, %62, %cst_21 [2] : vector<4x8x8xf32> to vector<4x8xf32>
    %64 = vector.shape_cast %63 : vector<4x8xf32> to vector<4x8x1xf32>
    %65 = tpu.reciprocal %64 {approx = true} : vector<4x8x1xf32> -> vector<4x8x1xf32>
    %66 = vector.broadcast %65 : vector<4x8x1xf32> to vector<4x8x8xf32>
    %67 = arith.mulf %62, %66 : vector<4x8x8xf32>
    %68 = arith.truncf %67 : vector<4x8x8xf32> to vector<4x8x8xbf16>
    "tpu.trace_start"() <{level = 10 : i32, message = "hnm,hmd->hnd"}> : () -> ()
    %cst_22 = arith.constant dense<0.000000e+00> : vector<4x8x8xf32>
    %69 = tpu.matmul %68, %47, %cst_22 {dimension_numbers = #tpu.dot_dimension_numbers<[2], [1], [1], [2], [0, 0, 0, 1, 1, 2], [0], [0]>} : vector<4x8x8xbf16>, vector<4x8x8xbf16>, vector<4x8x8xf32> -> vector<4x8x8xf32>
    "tpu.trace_stop"() : () -> ()
    %70 = tpu.transpose %69, [1, 0, 2] : vector<4x8x8xf32> -> vector<8x4x8xf32>
    %71 = vector.shape_cast %70 : vector<8x4x8xf32> to vector<8x32xf32>
    %72 = arith.index_cast %51 : i32 to index
    %c0_23 = arith.constant 0 : index
    %73 = vector.load %arg20[%72, %c0_23] : memref<8x32xf32, #tpu.memory_space<vmem>>, vector<8x32xf32>
    tpu.vector_store %arg20[%72, %c0_23], %71 {strides = array<i32>} : memref<8x32xf32, #tpu.memory_space<vmem>>, vector<8x32xf32>,
    %c1_i32_24 = arith.constant 1 : i32
    %c0_25 = arith.constant 0 : index
    %c0_26 = arith.constant 0 : index
    %74 = vector.load %arg20[%c0_25, %c0_26] : memref<8x32xf32, #tpu.memory_space<vmem>>, vector<8x32xf32>
    %75 = arith.truncf %74 : vector<8x32xf32> to vector<8x32xbf16>
    %c0_27 = arith.constant 0 : index
    %c0_28 = arith.constant 0 : index
    %76 = vector.load %arg6[%c0_27, %c0_28] : memref<32x32xbf16, #tpu.memory_space<vmem>>, vector<32x32xbf16>
    %cst_29 = arith.constant dense<0.000000e+00> : vector<8x32xf32>
    %77 = tpu.matmul %75, %76, %cst_29 {dimension_numbers = #tpu.dot_dimension_numbers<[1], [0], [0], [1], [0, 0, 1, 1], [], []>} : vector<8x32xbf16>, vector<32x32xbf16>, vector<8x32xf32> -> vector<8x32xf32>
    %c0_30 = arith.constant 0 : index
    %c0_31 = arith.constant 0 : index
    %78 = vector.load %arg7[%c0_30, %c0_31] : memref<1x32xf32, #tpu.memory_space<vmem>>, vector<1x32xf32>
    %79 = vector.shape_cast %78 : vector<1x32xf32> to vector<32xf32>
    %80 = vector.shape_cast %79 : vector<32xf32> to vector<1x32xf32>
    %81 = vector.broadcast %80 : vector<1x32xf32> to vector<8x32xf32>
    %82 = arith.addf %77, %81 : vector<8x32xf32>
    %83 = arith.addf %1, %82 : vector<8x32xf32>
    %c0_32 = arith.constant 0 : index
    %c0_33 = arith.constant 0 : index
    %84 = vector.load %arg8[%c0_32, %c0_33] : memref<1x32xf32, #tpu.memory_space<vmem>>, vector<1x32xf32>
    %85 = vector.shape_cast %84 : vector<1x32xf32> to vector<32xf32>
    %c0_34 = arith.constant 0 : index
    %c0_35 = arith.constant 0 : index
    %86 = vector.load %arg9[%c0_34, %c0_35] : memref<1x32xf32, #tpu.memory_space<vmem>>, vector<1x32xf32>
    %87 = vector.shape_cast %86 : vector<1x32xf32> to vector<32xf32>
    %cst_36 = arith.constant dense<0.000000e+00> : vector<8xf32>
    %88 = vector.multi_reduction <add>, %83, %cst_36 [1] : vector<8x32xf32> to vector<8xf32>
    %89 = vector.shape_cast %88 : vector<8xf32> to vector<8x1xf32>
    %cst_37 = arith.constant 3.200000e+01 : f32
    %90 = vector.broadcast %cst_37 : f32 to vector<8x1xf32>
    %91 = arith.divf %89, %90 : vector<8x1xf32>
    %92 = vector.broadcast %91 : vector<8x1xf32> to vector<8x32xf32>
    %93 = arith.subf %83, %92 : vector<8x32xf32>
    %94 = arith.mulf %93, %93 : vector<8x32xf32>
    %cst_38 = arith.constant dense<0.000000e+00> : vector<8xf32>
    %95 = vector.multi_reduction <add>, %94, %cst_38 [1] : vector<8x32xf32> to vector<8xf32>
    %96 = vector.shape_cast %95 : vector<8xf32> to vector<8x1xf32>
    %cst_39 = arith.constant 3.200000e+01 : f32
    %97 = vector.broadcast %cst_39 : f32 to vector<8x1xf32>
    %98 = arith.divf %96, %97 : vector<8x1xf32>
    %99 = vector.broadcast %91 : vector<8x1xf32> to vector<8x32xf32>
    %100 = arith.subf %83, %99 : vector<8x32xf32>
    %cst_40 = arith.constant 9.99999974E-6 : f32
    %101 = vector.broadcast %cst_40 : f32 to vector<8x1xf32>
    %102 = arith.addf %98, %101 : vector<8x1xf32>
    %103 = math.rsqrt %102 : vector<8x1xf32>
    %104 = vector.broadcast %103 : vector<8x1xf32> to vector<8x32xf32>
    %105 = arith.mulf %100, %104 : vector<8x32xf32>
    %106 = vector.shape_cast %85 : vector<32xf32> to vector<1x32xf32>
    %107 = vector.broadcast %106 : vector<1x32xf32> to vector<8x32xf32>
    %108 = arith.mulf %105, %107 : vector<8x32xf32>
    %109 = vector.shape_cast %87 : vector<32xf32> to vector<1x32xf32>
    %110 = vector.broadcast %109 : vector<1x32xf32> to vector<8x32xf32>
    %111 = arith.addf %108, %110 : vector<8x32xf32>
    %112 = arith.truncf %111 : vector<8x32xf32> to vector<8x32xbf16>
    %c0_41 = arith.constant 0 : index
    %c0_42 = arith.constant 0 : index
    %113 = vector.load %arg10[%c0_41, %c0_42] : memref<32x128xbf16, #tpu.memory_space<vmem>>, vector<32x128xbf16>
    %cst_43 = arith.constant dense<0.000000e+00> : vector<8x128xf32>
    %114 = tpu.matmul %112, %113, %cst_43 {dimension_numbers = #tpu.dot_dimension_numbers<[1], [0], [0], [1], [0, 0, 1, 1], [], []>} : vector<8x32xbf16>, vector<32x128xbf16>, vector<8x128xf32> -> vector<8x128xf32>
    %c0_44 = arith.constant 0 : index
    %c0_45 = arith.constant 0 : index
    %115 = vector.load %arg11[%c0_44, %c0_45] : memref<1x128xf32, #tpu.memory_space<vmem>>, vector<1x128xf32>
    %116 = vector.shape_cast %115 : vector<1x128xf32> to vector<128xf32>
    %117 = vector.shape_cast %116 : vector<128xf32> to vector<1x128xf32>
    %118 = vector.broadcast %117 : vector<1x128xf32> to vector<8x128xf32>
    %119 = arith.addf %114, %118 : vector<8x128xf32>
    %c0_46 = arith.constant 0 : index
    %c0_47 = arith.constant 0 : index
    %120 = vector.load %arg12[%c0_46, %c0_47] : memref<1x128xf32, #tpu.memory_space<vmem>>, vector<1x128xf32>
    %121 = vector.shape_cast %120 : vector<1x128xf32> to vector<128xf32>
    %c0_48 = arith.constant 0 : index
    %c0_49 = arith.constant 0 : index
    %122 = vector.load %arg13[%c0_48, %c0_49] : memref<1x128xf32, #tpu.memory_space<vmem>>, vector<1x128xf32>
    %123 = vector.shape_cast %122 : vector<1x128xf32> to vector<128xf32>
    %cst_50 = arith.constant dense<0.000000e+00> : vector<8xf32>
    %124 = vector.multi_reduction <add>, %119, %cst_50 [1] : vector<8x128xf32> to vector<8xf32>
    %125 = vector.shape_cast %124 : vector<8xf32> to vector<8x1xf32>
    %cst_51 = arith.constant 1.280000e+02 : f32
    %126 = vector.broadcast %cst_51 : f32 to vector<8x1xf32>
    %127 = arith.divf %125, %126 : vector<8x1xf32>
    %128 = vector.broadcast %127 : vector<8x1xf32> to vector<8x128xf32>
    %129 = arith.subf %119, %128 : vector<8x128xf32>
    %130 = arith.mulf %129, %129 : vector<8x128xf32>
    %cst_52 = arith.constant dense<0.000000e+00> : vector<8xf32>
    %131 = vector.multi_reduction <add>, %130, %cst_52 [1] : vector<8x128xf32> to vector<8xf32>
    %132 = vector.shape_cast %131 : vector<8xf32> to vector<8x1xf32>
    %cst_53 = arith.constant 1.280000e+02 : f32
    %133 = vector.broadcast %cst_53 : f32 to vector<8x1xf32>
    %134 = arith.divf %132, %133 : vector<8x1xf32>
    %135 = vector.broadcast %127 : vector<8x1xf32> to vector<8x128xf32>
    %136 = arith.subf %119, %135 : vector<8x128xf32>
    %cst_54 = arith.constant 9.99999974E-6 : f32
    %137 = vector.broadcast %cst_54 : f32 to vector<8x1xf32>
    %138 = arith.addf %134, %137 : vector<8x1xf32>
    %139 = math.rsqrt %138 : vector<8x1xf32>
    %140 = vector.broadcast %139 : vector<8x1xf32> to vector<8x128xf32>
    %141 = arith.mulf %136, %140 : vector<8x128xf32>
    %142 = vector.shape_cast %121 : vector<128xf32> to vector<1x128xf32>
    %143 = vector.broadcast %142 : vector<1x128xf32> to vector<8x128xf32>
    %144 = arith.mulf %141, %143 : vector<8x128xf32>
    %145 = vector.shape_cast %123 : vector<128xf32> to vector<1x128xf32>
    %146 = vector.broadcast %145 : vector<1x128xf32> to vector<8x128xf32>
    %147 = arith.addf %144, %146 : vector<8x128xf32>
    %cst_55 = arith.constant 5.000000e-01 : f32
    %148 = vector.broadcast %cst_55 : f32 to vector<8x128xf32>
    %149 = arith.mulf %148, %147 : vector<8x128xf32>
    %cst_56 = arith.constant 0.707106769 : f32
    %150 = vector.broadcast %cst_56 : f32 to vector<8x128xf32>
    %151 = arith.mulf %147, %150 : vector<8x128xf32>
    %152 = math.erf %151 : vector<8x128xf32>
    %cst_57 = arith.constant 1.000000e+00 : f32
    %153 = vector.broadcast %cst_57 : f32 to vector<8x128xf32>
    %154 = arith.addf %153, %152 : vector<8x128xf32>
    %155 = arith.mulf %149, %154 : vector<8x128xf32>
    %156 = arith.truncf %155 : vector<8x128xf32> to vector<8x128xbf16>
    %c0_58 = arith.constant 0 : index
    %c0_59 = arith.constant 0 : index
    %157 = vector.load %arg14[%c0_58, %c0_59] : memref<128x32xbf16, #tpu.memory_space<vmem>>, vector<128x32xbf16>
    %cst_60 = arith.constant dense<0.000000e+00> : vector<8x32xf32>
    %158 = tpu.matmul %156, %157, %cst_60 {dimension_numbers = #tpu.dot_dimension_numbers<[1], [0], [0], [1], [0, 0, 1, 1], [], []>} : vector<8x128xbf16>, vector<128x32xbf16>, vector<8x32xf32> -> vector<8x32xf32>
    %c0_61 = arith.constant 0 : index
    %c0_62 = arith.constant 0 : index
    %159 = vector.load %arg15[%c0_61, %c0_62] : memref<1x32xf32, #tpu.memory_space<vmem>>, vector<1x32xf32>
    %160 = vector.shape_cast %159 : vector<1x32xf32> to vector<32xf32>
    %161 = vector.shape_cast %160 : vector<32xf32> to vector<1x32xf32>
    %162 = vector.broadcast %161 : vector<1x32xf32> to vector<8x32xf32>
    %163 = arith.addf %158, %162 : vector<8x32xf32>
    %c0_63 = arith.constant 0 : index
    %c0_64 = arith.constant 0 : index
    %164 = vector.load %arg16[%c0_63, %c0_64] : memref<1x32xf32, #tpu.memory_space<vmem>>, vector<1x32xf32>
    %165 = vector.shape_cast %164 : vector<1x32xf32> to vector<32xf32>
    %c0_65 = arith.constant 0 : index
    %c0_66 = arith.constant 0 : index
    %166 = vector.load %arg17[%c0_65, %c0_66] : memref<1x32xf32, #tpu.memory_space<vmem>>, vector<1x32xf32>
    %167 = vector.shape_cast %166 : vector<1x32xf32> to vector<32xf32>
    %cst_67 = arith.constant dense<0.000000e+00> : vector<8xf32>
    %168 = vector.multi_reduction <add>, %163, %cst_67 [1] : vector<8x32xf32> to vector<8xf32>
    %169 = vector.shape_cast %168 : vector<8xf32> to vector<8x1xf32>
    %cst_68 = arith.constant 3.200000e+01 : f32
    %170 = vector.broadcast %cst_68 : f32 to vector<8x1xf32>
    %171 = arith.divf %169, %170 : vector<8x1xf32>
    %172 = vector.broadcast %171 : vector<8x1xf32> to vector<8x32xf32>
    %173 = arith.subf %163, %172 : vector<8x32xf32>
    %174 = arith.mulf %173, %173 : vector<8x32xf32>
    %cst_69 = arith.constant dense<0.000000e+00> : vector<8xf32>
    %175 = vector.multi_reduction <add>, %174, %cst_69 [1] : vector<8x32xf32> to vector<8xf32>
    %176 = vector.shape_cast %175 : vector<8xf32> to vector<8x1xf32>
    %cst_70 = arith.constant 3.200000e+01 : f32
    %177 = vector.broadcast %cst_70 : f32 to vector<8x1xf32>
    %178 = arith.divf %176, %177 : vector<8x1xf32>
    %179 = vector.broadcast %171 : vector<8x1xf32> to vector<8x32xf32>
    %180 = arith.subf %163, %179 : vector<8x32xf32>
    %cst_71 = arith.constant 9.99999974E-6 : f32
    %181 = vector.broadcast %cst_71 : f32 to vector<8x1xf32>
    %182 = arith.addf %178, %181 : vector<8x1xf32>
    %183 = math.rsqrt %182 : vector<8x1xf32>
    %184 = vector.broadcast %183 : vector<8x1xf32> to vector<8x32xf32>
    %185 = arith.mulf %180, %184 : vector<8x32xf32>
    %186 = vector.shape_cast %165 : vector<32xf32> to vector<1x32xf32>
    %187 = vector.broadcast %186 : vector<1x32xf32> to vector<8x32xf32>
    %188 = arith.mulf %185, %187 : vector<8x32xf32>
    %189 = vector.shape_cast %167 : vector<32xf32> to vector<1x32xf32>
    %190 = vector.broadcast %189 : vector<1x32xf32> to vector<8x32xf32>
    %191 = arith.addf %188, %190 : vector<8x32xf32>
    %192 = arith.addf %83, %191 : vector<8x32xf32>
    %c0_72 = arith.constant 0 : index
    %c0_73 = arith.constant 0 : index
    %c0_74 = arith.constant 0 : index
    %193 = vector.load %arg18[%c0_72, %c0_73, %c0_74] : memref<1x8x32xf32, #tpu.memory_space<vmem>>, vector<1x8x32xf32>
    %194 = vector.shape_cast %193 : vector<1x8x32xf32> to vector<8x32xf32>
    %195 = vector.shape_cast %192 : vector<8x32xf32> to vector<1x8x32xf32>
    tpu.vector_store %arg18[%c0_72, %c0_73, %c0_74], %195 {strides = array<i32>} : memref<1x8x32xf32, #tpu.memory_space<vmem>>, vector<1x8x32xf32>,
    return
  }
  func.func @transform_0(%arg0: i32) -> (i32, i32, i32) {
    %c0_i32 = arith.constant 0 : i32
    %c0_i32_0 = arith.constant 0 : i32
    %c0_i32_1 = arith.constant 0 : i32
    return %arg0, %c0_i32, %c0_i32_0 : i32, i32, i32
  }
  func.func @transform_1(%arg0: i32) -> (i32, i32) {
    %c0_i32 = arith.constant 0 : i32
    %c0_i32_0 = arith.constant 0 : i32
    %c0_i32_1 = arith.constant 0 : i32
    return %c0_i32, %c0_i32_0 : i32, i32
  }
  func.func @transform_2(%arg0: i32) -> (i32, i32) {
    %c0_i32 = arith.constant 0 : i32
    %c0_i32_0 = arith.constant 0 : i32
    %c0_i32_1 = arith.constant 0 : i32
    return %c0_i32, %c0_i32_0 : i32, i32
  }
  func.func @transform_3(%arg0: i32) -> (i32, i32) {
    %c0_i32 = arith.constant 0 : i32
    %c0_i32_0 = arith.constant 0 : i32
    %c0_i32_1 = arith.constant 0 : i32
    return %c0_i32, %c0_i32_0 : i32, i32
  }
  func.func @transform_4(%arg0: i32) -> (i32, i32) {
    %c0_i32 = arith.constant 0 : i32
    %c0_i32_0 = arith.constant 0 : i32
    %c0_i32_1 = arith.constant 0 : i32
    return %c0_i32, %c0_i32_0 : i32, i32
  }
  func.func @transform_5(%arg0: i32) -> (i32, i32) {
    %c0_i32 = arith.constant 0 : i32
    %c0_i32_0 = arith.constant 0 : i32
    %c0_i32_1 = arith.constant 0 : i32
    return %c0_i32, %c0_i32_0 : i32, i32
  }
  func.func @transform_6(%arg0: i32) -> (i32, i32) {
    %c0_i32 = arith.constant 0 : i32
    %c0_i32_0 = arith.constant 0 : i32
    %c0_i32_1 = arith.constant 0 : i32
    return %c0_i32, %c0_i32_0 : i32, i32
  }
  func.func @transform_7(%arg0: i32) -> (i32, i32) {
    %c0_i32 = arith.constant 0 : i32
    %c0_i32_0 = arith.constant 0 : i32
    %c0_i32_1 = arith.constant 0 : i32
    return %c0_i32, %c0_i32_0 : i32, i32
  }
  func.func @transform_8(%arg0: i32) -> (i32, i32) {
    %c0_i32 = arith.constant 0 : i32
    %c0_i32_0 = arith.constant 0 : i32
    %c0_i32_1 = arith.constant 0 : i32
    return %c0_i32, %c0_i32_0 : i32, i32
  }
  func.func @transform_9(%arg0: i32) -> (i32, i32) {
    %c0_i32 = arith.constant 0 : i32
    %c0_i32_0 = arith.constant 0 : i32
    %c0_i32_1 = arith.constant 0 : i32
    return %c0_i32, %c0_i32_0 : i32, i32
  }
  func.func @transform_10(%arg0: i32) -> (i32, i32) {
    %c0_i32 = arith.constant 0 : i32
    %c0_i32_0 = arith.constant 0 : i32
    %c0_i32_1 = arith.constant 0 : i32
    return %c0_i32, %c0_i32_0 : i32, i32
  }
  func.func @transform_11(%arg0: i32) -> (i32, i32) {
    %c0_i32 = arith.constant 0 : i32
    %c0_i32_0 = arith.constant 0 : i32
    %c0_i32_1 = arith.constant 0 : i32
    return %c0_i32, %c0_i32_0 : i32, i32
  }
  func.func @transform_12(%arg0: i32) -> (i32, i32) {
    %c0_i32 = arith.constant 0 : i32
    %c0_i32_0 = arith.constant 0 : i32
    %c0_i32_1 = arith.constant 0 : i32
    return %c0_i32, %c0_i32_0 : i32, i32
  }
  func.func @transform_13(%arg0: i32) -> (i32, i32) {
    %c0_i32 = arith.constant 0 : i32
    %c0_i32_0 = arith.constant 0 : i32
    %c0_i32_1 = arith.constant 0 : i32
    return %c0_i32, %c0_i32_0 : i32, i32
  }
  func.func @transform_14(%arg0: i32) -> (i32, i32) {
    %c0_i32 = arith.constant 0 : i32
    %c0_i32_0 = arith.constant 0 : i32
    %c0_i32_1 = arith.constant 0 : i32
    return %c0_i32, %c0_i32_0 : i32, i32
  }
  func.func @transform_15(%arg0: i32) -> (i32, i32) {
    %c0_i32 = arith.constant 0 : i32
    %c0_i32_0 = arith.constant 0 : i32
    %c0_i32_1 = arith.constant 0 : i32
    return %c0_i32, %c0_i32_0 : i32, i32
  }
  func.func @transform_16(%arg0: i32) -> (i32, i32) {
    %c0_i32 = arith.constant 0 : i32
    %c0_i32_0 = arith.constant 0 : i32
    %c0_i32_1 = arith.constant 0 : i32
    return %c0_i32, %c0_i32_0 : i32, i32
  }
  func.func @transform_17(%arg0: i32) -> (i32, i32, i32) {
    %c0_i32 = arith.constant 0 : i32
    %c0_i32_0 = arith.constant 0 : i32
    %c0_i32_1 = arith.constant 0 : i32
    return %arg0, %c0_i32, %c0_i32_0 : i32, i32, i32
  }
}

module attributes {stable_mosaic.version = 11 : i64} {
  func.func @encoder_layer_kernel(%arg0: i32, %arg1: memref<1x8x32xf32, #tpu.memory_space<vmem>>, %arg2: memref<1x32xf32, #tpu.memory_space<vmem>>, %arg3: memref<1x32xf32, #tpu.memory_space<vmem>>, %arg4: memref<32x96xbf16, #tpu.memory_space<vmem>>, %arg5: memref<1x96xf32, #tpu.memory_space<vmem>>, %arg6: memref<32x32xbf16, #tpu.memory_space<vmem>>, %arg7: memref<1x32xf32, #tpu.memory_space<vmem>>, %arg8: memref<1x32xf32, #tpu.memory_space<vmem>>, %arg9: memref<1x32xf32, #tpu.memory_space<vmem>>, %arg10: memref<32x128xbf16, #tpu.memory_space<vmem>>, %arg11: memref<1x128xf32, #tpu.memory_space<vmem>>, %arg12: memref<1x128xf32, #tpu.memory_space<vmem>>, %arg13: memref<1x128xf32, #tpu.memory_space<vmem>>, %arg14: memref<128x32xbf16, #tpu.memory_space<vmem>>, %arg15: memref<1x32xf32, #tpu.memory_space<vmem>>, %arg16: memref<1x32xf32, #tpu.memory_space<vmem>>, %arg17: memref<1x32xf32, #tpu.memory_space<vmem>>, %arg18: memref<1x8x32xf32, #tpu.memory_space<vmem>>, %arg19: memref<8x32xf32, #tpu.memory_space<vmem>>, %arg20: memref<8x32xf32, #tpu.memory_space<vmem>>) attributes {dimension_semantics = [#tpu.dimension_semantics<parallel>], iteration_bounds = array<i64: 2>, scalar_prefetch = 0 : i64, scratch_operands = 2 : i64, tpu.core_type = #tpu.core_type<tc>, window_params = [{transform_indices = @transform_0, window_bounds = array<i64: 1, 8, 32>}, {pipeline_mode = #tpu.pipeline_mode<synchronous>, transform_indices = @transform_1, window_bounds = array<i64: 1, 32>}, {pipeline_mode = #tpu.pipeline_mode<synchronous>, transform_indices = @transform_2, window_bounds = array<i64: 1, 32>}, {pipeline_mode = #tpu.pipeline_mode<synchronous>, transform_indices = @transform_3, window_bounds = array<i64: 32, 96>}, {pipeline_mode = #tpu.pipeline_mode<synchronous>, transform_indices = @transform_4, window_bounds = array<i64: 1, 96>}, {pipeline_mode = #tpu.pipeline_mode<synchronous>, transform_indices = @transform_5, window_bounds = array<i64: 32, 32>}, {pipeline_mode = #tpu.pipeline_mode<synchronous>, transform_indices = @transform_6, window_bounds = array<i64: 1, 32>}, {pipeline_mode = #tpu.pipeline_mode<synchronous>, transform_indices = @transform_7, window_bounds = array<i64: 1, 32>}, {pipeline_mode = #tpu.pipeline_mode<synchronous>, transform_indices = @transform_8, window_bounds = array<i64: 1, 32>}, {pipeline_mode = #tpu.pipeline_mode<synchronous>, transform_indices = @transform_9, window_bounds = array<i64: 32, 128>}, {pipeline_mode = #tpu.pipeline_mode<synchronous>, transform_indices = @transform_10, window_bounds = array<i64: 1, 128>}, {pipeline_mode = #tpu.pipeline_mode<synchronous>, transform_indices = @transform_11, window_bounds = array<i64: 1, 128>}, {pipeline_mode = #tpu.pipeline_mode<synchronous>, transform_indices = @transform_12, window_bounds = array<i64: 1, 128>}, {pipeline_mode = #tpu.pipeline_mode<synchronous>, transform_indices = @transform_13, window_bounds = array<i64: 128, 32>}, {pipeline_mode = #tpu.pipeline_mode<synchronous>, transform_indices = @transform_14, window_bounds = array<i64: 1, 32>}, {pipeline_mode = #tpu.pipeline_mode<synchronous>, transform_indices = @transform_15, window_bounds = array<i64: 1, 32>}, {pipeline_mode = #tpu.pipeline_mode<synchronous>, transform_indices = @transform_16, window_bounds = array<i64: 1, 32>}, {transform_indices = @transform_17, window_bounds = array<i64: 1, 8, 32>}]} {
    %c0 = arith.constant 0 : index
    %c0_0 = arith.constant 0 : index
    %c0_1 = arith.constant 0 : index
    %0 = vector.load %arg1[%c0, %c0_0, %c0_1] : memref<1x8x32xf32, #tpu.memory_space<vmem>>, vector<1x8x32xf32>
    %1 = vector.shape_cast %0 : vector<1x8x32xf32> to vector<8x32xf32>
    %c0_2 = arith.constant 0 : index
    %c0_3 = arith.constant 0 : index
    %2 = vector.load %arg2[%c0_2, %c0_3] : memref<1x32xf32, #tpu.memory_space<vmem>>, vector<1x32xf32>
    %3 = vector.shape_cast %2 : vector<1x32xf32> to vector<32xf32>
    %c0_4 = arith.constant 0 : index
    %c0_5 = arith.constant 0 : index
    %4 = vector.load %arg3[%c0_4, %c0_5] : memref<1x32xf32, #tpu.memory_space<vmem>>, vector<1x32xf32>
    %5 = vector.shape_cast %4 : vector<1x32xf32> to vector<32xf32>
    %cst = arith.constant dense<0.000000e+00> : vector<8xf32>
    %6 = vector.multi_reduction <add>, %1, %cst [1] : vector<8x32xf32> to vector<8xf32>
    %7 = vector.shape_cast %6 : vector<8xf32> to vector<8x1xf32>
    %cst_6 = arith.constant 3.200000e+01 : f32
    %8 = vector.broadcast %cst_6 : f32 to vector<8x1xf32>
    %9 = arith.divf %7, %8 : vector<8x1xf32>
    %10 = vector.broadcast %9 : vector<8x1xf32> to vector<8x32xf32>
    %11 = arith.subf %1, %10 : vector<8x32xf32>
    %12 = arith.mulf %11, %11 : vector<8x32xf32>
    %cst_7 = arith.constant dense<0.000000e+00> : vector<8xf32>
    %13 = vector.multi_reduction <add>, %12, %cst_7 [1] : vector<8x32xf32> to vector<8xf32>
    %14 = vector.shape_cast %13 : vector<8xf32> to vector<8x1xf32>
    %cst_8 = arith.constant 3.200000e+01 : f32
    %15 = vector.broadcast %cst_8 : f32 to vector<8x1xf32>
    %16 = arith.divf %14, %15 : vector<8x1xf32>
    %17 = vector.broadcast %9 : vector<8x1xf32> to vector<8x32xf32>
    %18 = arith.subf %1, %17 : vector<8x32xf32>
    %cst_9 = arith.constant 9.99999974E-6 : f32
    %19 = vector.broadcast %cst_9 : f32 to vector<8x1xf32>
    %20 = arith.addf %16, %19 : vector<8x1xf32>
    %21 = math.rsqrt %20 : vector<8x1xf32>
    %22 = vector.broadcast %21 : vector<8x1xf32> to vector<8x32xf32>
    %23 = arith.mulf %18, %22 : vector<8x32xf32>
    %24 = vector.shape_cast %3 : vector<32xf32> to vector<1x32xf32>
    %25 = vector.broadcast %24 : vector<1x32xf32> to vector<8x32xf32>
    %26 = arith.mulf %23, %25 : vector<8x32xf32>
    %27 = vector.shape_cast %5 : vector<32xf32> to vector<1x32xf32>
    %28 = vector.broadcast %27 : vector<1x32xf32> to vector<8x32xf32>
    %29 = arith.addf %26, %28 : vector<8x32xf32>
    %30 = arith.truncf %29 : vector<8x32xf32> to vector<8x32xbf16>
    %c0_10 = arith.constant 0 : index
    %c0_11 = arith.constant 0 : index
    %31 = vector.load %arg4[%c0_10, %c0_11] : memref<32x96xbf16, #tpu.memory_space<vmem>>, vector<32x96xbf16>
    %cst_12 = arith.constant dense<0.000000e+00> : vector<8x96xf32>
    %32 = tpu.matmul %30, %31, %cst_12 {dimension_numbers = #tpu.dot_dimension_numbers<[1], [0], [0], [1], [0, 0, 1, 1], [], []>} : vector<8x32xbf16>, vector<32x96xbf16>, vector<8x96xf32> -> vector<8x96xf32>
    %c0_13 = arith.constant 0 : index
    %c0_14 = arith.constant 0 : index
    %33 = vector.load %arg5[%c0_13, %c0_14] : memref<1x96xf32, #tpu.memory_space<vmem>>, vector<1x96xf32>
    %34 = vector.shape_cast %33 : vector<1x96xf32> to vector<96xf32>
    %35 = vector.shape_cast %34 : vector<96xf32> to vector<1x96xf32>
    %36 = vector.broadcast %35 : vector<1x96xf32> to vector<8x96xf32>
    %37 = arith.addf %32, %36 : vector<8x96xf32>
    %38 = vector.extract_strided_slice %37 {offsets = [0, 0], sizes = [8, 32], strides = [1, 1]} : vector<8x96xf32> to vector<8x32xf32>
    %c0_15 = arith.constant 0 : index
    %c0_16 = arith.constant 0 : index
    %39 = vector.load %arg19[%c0_15, %c0_16] : memref<8x32xf32, #tpu.memory_space<vmem>>, vector<8x32xf32>
    tpu.vector_store %arg19[%c0_15, %c0_16], %38 {strides = array<i32>} : memref<8x32xf32, #tpu.memory_space<vmem>>, vector<8x32xf32>,
    %40 = vector.extract_strided_slice %37 {offsets = [0, 32], sizes = [8, 32], strides = [1, 1]} : vector<8x96xf32> to vector<8x32xf32>
    %41 = vector.shape_cast %40 : vector<8x32xf32> to vector<8x4x8xf32>
    %42 = tpu.transpose %41, [1, 0, 2] : vector<8x4x8xf32> -> vector<4x8x8xf32>
    %43 = arith.truncf %42 : vector<4x8x8xf32> to vector<4x8x8xbf16>
    %44 = vector.extract_strided_slice %37 {offsets = [0, 64], sizes = [8, 32], strides = [1, 1]} : vector<8x96xf32> to vector<8x32xf32>
    %45 = vector.shape_cast %44 : vector<8x32xf32> to vector<8x4x8xf32>
    %46 = tpu.transpose %45, [1, 0, 2] : vector<8x4x8xf32> -> vector<4x8x8xf32>
    %47 = arith.truncf %46 : vector<4x8x8xf32> to vector<4x8x8xbf16>
    %c0_i32 = arith.constant 0 : i32
    %c1_i32 = arith.constant 1 : i32
    %48 = arith.muli %c0_i32, %c1_i32 : i32
    %c0_i32_17 = arith.constant 0 : i32
    %49 = arith.addi %c0_i32_17, %48 : i32
    %c8_i32 = arith.constant 8 : i32
    %50 = arith.muli %49, %c8_i32 : i32
    %51 = tpu.assume_multiple %50, 8 : i32
    %52 = arith.index_cast %51 : i32 to index
    %c0_18 = arith.constant 0 : index
    %53 = vector.load %arg19[%52, %c0_18] : memref<8x32xf32, #tpu.memory_space<vmem>>, vector<8x32xf32>
    %54 = vector.shape_cast %53 : vector<8x32xf32> to vector<8x4x8xf32>
    %55 = tpu.transpose %54, [1, 0, 2] : vector<8x4x8xf32> -> vector<4x8x8xf32>
    %56 = arith.truncf %55 : vector<4x8x8xf32> to vector<4x8x8xbf16>
    "tpu.trace_start"() <{level = 10 : i32, message = "hnd,hmd->hnm"}> : () -> ()
    %cst_19 = arith.constant dense<0.000000e+00> : vector<4x8x8xf32>
    %57 = tpu.matmul %56, %43, %cst_19 {dimension_numbers = #tpu.dot_dimension_numbers<[2], [2], [1], [1], [0, 0, 0, 1, 1, 1], [0], [0]>} : vector<4x8x8xbf16>, vector<4x8x8xbf16>, vector<4x8x8xf32> -> vector<4x8x8xf32>
    "tpu.trace_stop"() : () -> ()
    %cst_20 = arith.constant dense<0xFF800000> : vector<4x8xf32>
    %58 = vector.multi_reduction <maximumf>, %57, %cst_20 [2] : vector<4x8x8xf32> to vector<4x8xf32>
    %59 = vector.shape_cast %58 : vector<4x8xf32> to vector<4x8x1xf32>
    %60 = vector.broadcast %59 : vector<4x8x1xf32> to vector<4x8x8xf32>
    %61 = arith.subf %57, %60 : vector<4x8x8xf32>
    %62 = math.exp %61 : vector<4x8x8xf32>
    %cst_21 = arith.constant dense<0.000000e+00> : vector<4x8xf32>
    %63 = vector.multi_reduction <add>, %62, %cst_21 [2] : vector<4x8x8xf32> to vector<4x8xf32>
    %64 = vector.shape_cast %63 : vector<4x8xf32> to vector<4x8x1xf32>
    %65 = tpu.reciprocal %64 {approx = true} : vector<4x8x1xf32> -> vector<4x8x1xf32>
    %66 = vector.broadcast %65 : vector<4x8x1xf32> to vector<4x8x8xf32>
    %67 = arith.mulf %62, %66 : vector<4x8x8xf32>
    %68 = arith.truncf %67 : vector<4x8x8xf32> to vector<4x8x8xbf16>
    "tpu.trace_start"() <{level = 10 : i32, message = "hnm,hmd->hnd"}> : () -> ()
    %cst_22 = arith.constant dense<0.000000e+00> : vector<4x8x8xf32>
    %69 = tpu.matmul %68, %47, %cst_22 {dimension_numbers = #tpu.dot_dimension_numbers<[2], [1], [1], [2], [0, 0, 0, 1, 1, 2], [0], [0]>} : vector<4x8x8xbf16>, vector<4x8x8xbf16>, vector<4x8x8xf32> -> vector<4x8x8xf32>
    "tpu.trace_stop"() : () -> ()
    %70 = tpu.transpose %69, [1, 0, 2] : vector<4x8x8xf32> -> vector<8x4x8xf32>
    %71 = vector.shape_cast %70 : vector<8x4x8xf32> to vector<8x32xf32>
    %72 = arith.index_cast %51 : i32 to index
    %c0_23 = arith.constant 0 : index
    %73 = vector.load %arg20[%72, %c0_23] : memref<8x32xf32, #tpu.memory_space<vmem>>, vector<8x32xf32>
    tpu.vector_store %arg20[%72, %c0_23], %71 {strides = array<i32>} : memref<8x32xf32, #tpu.memory_space<vmem>>, vector<8x32xf32>,
    %c1_i32_24 = arith.constant 1 : i32
    %c0_25 = arith.constant 0 : index
    %c0_26 = arith.constant 0 : index
    %74 = vector.load %arg20[%c0_25, %c0_26] : memref<8x32xf32, #tpu.memory_space<vmem>>, vector<8x32xf32>
    %75 = arith.truncf %74 : vector<8x32xf32> to vector<8x32xbf16>
    %c0_27 = arith.constant 0 : index
    %c0_28 = arith.constant 0 : index
    %76 = vector.load %arg6[%c0_27, %c0_28] : memref<32x32xbf16, #tpu.memory_space<vmem>>, vector<32x32xbf16>
    %cst_29 = arith.constant dense<0.000000e+00> : vector<8x32xf32>
    %77 = tpu.matmul %75, %76, %cst_29 {dimension_numbers = #tpu.dot_dimension_numbers<[1], [0], [0], [1], [0, 0, 1, 1], [], []>} : vector<8x32xbf16>, vector<32x32xbf16>, vector<8x32xf32> -> vector<8x32xf32>
    %c0_30 = arith.constant 0 : index
    %c0_31 = arith.constant 0 : index
    %78 = vector.load %arg7[%c0_30, %c0_31] : memref<1x32xf32, #tpu.memory_space<vmem>>, vector<1x32xf32>
    %79 = vector.shape_cast %78 : vector<1x32xf32> to vector<32xf32>
    %80 = vector.shape_cast %79 : vector<32xf32> to vector<1x32xf32>
    %81 = vector.broadcast %80 : vector<1x32xf32> to vector<8x32xf32>
    %82 = arith.addf %77, %81 : vector<8x32xf32>
    %83 = arith.addf %1, %82 : vector<8x32xf32>
    %c0_32 = arith.constant 0 : index
    %c0_33 = arith.constant 0 : index
    %84 = vector.load %arg8[%c0_32, %c0_33] : memref<1x32xf32, #tpu.memory_space<vmem>>, vector<1x32xf32>
    %85 = vector.shape_cast %84 : vector<1x32xf32> to vector<32xf32>
    %c0_34 = arith.constant 0 : index
    %c0_35 = arith.constant 0 : index
    %86 = vector.load %arg9[%c0_34, %c0_35] : memref<1x32xf32, #tpu.memory_space<vmem>>, vector<1x32xf32>
    %87 = vector.shape_cast %86 : vector<1x32xf32> to vector<32xf32>
    %cst_36 = arith.constant dense<0.000000e+00> : vector<8xf32>
    %88 = vector.multi_reduction <add>, %83, %cst_36 [1] : vector<8x32xf32> to vector<8xf32>
    %89 = vector.shape_cast %88 : vector<8xf32> to vector<8x1xf32>
    %cst_37 = arith.constant 3.200000e+01 : f32
    %90 = vector.broadcast %cst_37 : f32 to vector<8x1xf32>
    %91 = arith.divf %89, %90 : vector<8x1xf32>
    %92 = vector.broadcast %91 : vector<8x1xf32> to vector<8x32xf32>
    %93 = arith.subf %83, %92 : vector<8x32xf32>
    %94 = arith.mulf %93, %93 : vector<8x32xf32>
    %cst_38 = arith.constant dense<0.000000e+00> : vector<8xf32>
    %95 = vector.multi_reduction <add>, %94, %cst_38 [1] : vector<8x32xf32> to vector<8xf32>
    %96 = vector.shape_cast %95 : vector<8xf32> to vector<8x1xf32>
    %cst_39 = arith.constant 3.200000e+01 : f32
    %97 = vector.broadcast %cst_39 : f32 to vector<8x1xf32>
    %98 = arith.divf %96, %97 : vector<8x1xf32>
    %99 = vector.broadcast %91 : vector<8x1xf32> to vector<8x32xf32>
    %100 = arith.subf %83, %99 : vector<8x32xf32>
    %cst_40 = arith.constant 9.99999974E-6 : f32
    %101 = vector.broadcast %cst_40 : f32 to vector<8x1xf32>
    %102 = arith.addf %98, %101 : vector<8x1xf32>
    %103 = math.rsqrt %102 : vector<8x1xf32>
    %104 = vector.broadcast %103 : vector<8x1xf32> to vector<8x32xf32>
    %105 = arith.mulf %100, %104 : vector<8x32xf32>
    %106 = vector.shape_cast %85 : vector<32xf32> to vector<1x32xf32>
    %107 = vector.broadcast %106 : vector<1x32xf32> to vector<8x32xf32>
    %108 = arith.mulf %105, %107 : vector<8x32xf32>
    %109 = vector.shape_cast %87 : vector<32xf32> to vector<1x32xf32>
    %110 = vector.broadcast %109 : vector<1x32xf32> to vector<8x32xf32>
    %111 = arith.addf %108, %110 : vector<8x32xf32>
    %112 = arith.truncf %111 : vector<8x32xf32> to vector<8x32xbf16>
    %c0_41 = arith.constant 0 : index
    %c0_42 = arith.constant 0 : index
    %113 = vector.load %arg10[%c0_41, %c0_42] : memref<32x128xbf16, #tpu.memory_space<vmem>>, vector<32x128xbf16>
    %cst_43 = arith.constant dense<0.000000e+00> : vector<8x128xf32>
    %114 = tpu.matmul %112, %113, %cst_43 {dimension_numbers = #tpu.dot_dimension_numbers<[1], [0], [0], [1], [0, 0, 1, 1], [], []>} : vector<8x32xbf16>, vector<32x128xbf16>, vector<8x128xf32> -> vector<8x128xf32>
    %c0_44 = arith.constant 0 : index
    %c0_45 = arith.constant 0 : index
    %115 = vector.load %arg11[%c0_44, %c0_45] : memref<1x128xf32, #tpu.memory_space<vmem>>, vector<1x128xf32>
    %116 = vector.shape_cast %115 : vector<1x128xf32> to vector<128xf32>
    %117 = vector.shape_cast %116 : vector<128xf32> to vector<1x128xf32>
    %118 = vector.broadcast %117 : vector<1x128xf32> to vector<8x128xf32>
    %119 = arith.addf %114, %118 : vector<8x128xf32>
    %c0_46 = arith.constant 0 : index
    %c0_47 = arith.constant 0 : index
    %120 = vector.load %arg12[%c0_46, %c0_47] : memref<1x128xf32, #tpu.memory_space<vmem>>, vector<1x128xf32>
    %121 = vector.shape_cast %120 : vector<1x128xf32> to vector<128xf32>
    %c0_48 = arith.constant 0 : index
    %c0_49 = arith.constant 0 : index
    %122 = vector.load %arg13[%c0_48, %c0_49] : memref<1x128xf32, #tpu.memory_space<vmem>>, vector<1x128xf32>
    %123 = vector.shape_cast %122 : vector<1x128xf32> to vector<128xf32>
    %cst_50 = arith.constant dense<0.000000e+00> : vector<8xf32>
    %124 = vector.multi_reduction <add>, %119, %cst_50 [1] : vector<8x128xf32> to vector<8xf32>
    %125 = vector.shape_cast %124 : vector<8xf32> to vector<8x1xf32>
    %cst_51 = arith.constant 1.280000e+02 : f32
    %126 = vector.broadcast %cst_51 : f32 to vector<8x1xf32>
    %127 = arith.divf %125, %126 : vector<8x1xf32>
    %128 = vector.broadcast %127 : vector<8x1xf32> to vector<8x128xf32>
    %129 = arith.subf %119, %128 : vector<8x128xf32>
    %130 = arith.mulf %129, %129 : vector<8x128xf32>
    %cst_52 = arith.constant dense<0.000000e+00> : vector<8xf32>
    %131 = vector.multi_reduction <add>, %130, %cst_52 [1] : vector<8x128xf32> to vector<8xf32>
    %132 = vector.shape_cast %131 : vector<8xf32> to vector<8x1xf32>
    %cst_53 = arith.constant 1.280000e+02 : f32
    %133 = vector.broadcast %cst_53 : f32 to vector<8x1xf32>
    %134 = arith.divf %132, %133 : vector<8x1xf32>
    %135 = vector.broadcast %127 : vector<8x1xf32> to vector<8x128xf32>
    %136 = arith.subf %119, %135 : vector<8x128xf32>
    %cst_54 = arith.constant 9.99999974E-6 : f32
    %137 = vector.broadcast %cst_54 : f32 to vector<8x1xf32>
    %138 = arith.addf %134, %137 : vector<8x1xf32>
    %139 = math.rsqrt %138 : vector<8x1xf32>
    %140 = vector.broadcast %139 : vector<8x1xf32> to vector<8x128xf32>
    %141 = arith.mulf %136, %140 : vector<8x128xf32>
    %142 = vector.shape_cast %121 : vector<128xf32> to vector<1x128xf32>
    %143 = vector.broadcast %142 : vector<1x128xf32> to vector<8x128xf32>
    %144 = arith.mulf %141, %143 : vector<8x128xf32>
    %145 = vector.shape_cast %123 : vector<128xf32> to vector<1x128xf32>
    %146 = vector.broadcast %145 : vector<1x128xf32> to vector<8x128xf32>
    %147 = arith.addf %144, %146 : vector<8x128xf32>
    %cst_55 = arith.constant 5.000000e-01 : f32
    %148 = vector.broadcast %cst_55 : f32 to vector<8x128xf32>
    %149 = arith.mulf %148, %147 : vector<8x128xf32>
    %cst_56 = arith.constant 0.707106769 : f32
    %150 = vector.broadcast %cst_56 : f32 to vector<8x128xf32>
    %151 = arith.mulf %147, %150 : vector<8x128xf32>
    %152 = math.erf %151 : vector<8x128xf32>
    %cst_57 = arith.constant 1.000000e+00 : f32
    %153 = vector.broadcast %cst_57 : f32 to vector<8x128xf32>
    %154 = arith.addf %153, %152 : vector<8x128xf32>
    %155 = arith.mulf %149, %154 : vector<8x128xf32>
    %156 = arith.truncf %155 : vector<8x128xf32> to vector<8x128xbf16>
    %c0_58 = arith.constant 0 : index
    %c0_59 = arith.constant 0 : index
    %157 = vector.load %arg14[%c0_58, %c0_59] : memref<128x32xbf16, #tpu.memory_space<vmem>>, vector<128x32xbf16>
    %cst_60 = arith.constant dense<0.000000e+00> : vector<8x32xf32>
    %158 = tpu.matmul %156, %157, %cst_60 {dimension_numbers = #tpu.dot_dimension_numbers<[1], [0], [0], [1], [0, 0, 1, 1], [], []>} : vector<8x128xbf16>, vector<128x32xbf16>, vector<8x32xf32> -> vector<8x32xf32>
    %c0_61 = arith.constant 0 : index
    %c0_62 = arith.constant 0 : index
    %159 = vector.load %arg15[%c0_61, %c0_62] : memref<1x32xf32, #tpu.memory_space<vmem>>, vector<1x32xf32>
    %160 = vector.shape_cast %159 : vector<1x32xf32> to vector<32xf32>
    %161 = vector.shape_cast %160 : vector<32xf32> to vector<1x32xf32>
    %162 = vector.broadcast %161 : vector<1x32xf32> to vector<8x32xf32>
    %163 = arith.addf %158, %162 : vector<8x32xf32>
    %c0_63 = arith.constant 0 : index
    %c0_64 = arith.constant 0 : index
    %164 = vector.load %arg16[%c0_63, %c0_64] : memref<1x32xf32, #tpu.memory_space<vmem>>, vector<1x32xf32>
    %165 = vector.shape_cast %164 : vector<1x32xf32> to vector<32xf32>
    %c0_65 = arith.constant 0 : index
    %c0_66 = arith.constant 0 : index
    %166 = vector.load %arg17[%c0_65, %c0_66] : memref<1x32xf32, #tpu.memory_space<vmem>>, vector<1x32xf32>
    %167 = vector.shape_cast %166 : vector<1x32xf32> to vector<32xf32>
    %cst_67 = arith.constant dense<0.000000e+00> : vector<8xf32>
    %168 = vector.multi_reduction <add>, %163, %cst_67 [1] : vector<8x32xf32> to vector<8xf32>
    %169 = vector.shape_cast %168 : vector<8xf32> to vector<8x1xf32>
    %cst_68 = arith.constant 3.200000e+01 : f32
    %170 = vector.broadcast %cst_68 : f32 to vector<8x1xf32>
    %171 = arith.divf %169, %170 : vector<8x1xf32>
    %172 = vector.broadcast %171 : vector<8x1xf32> to vector<8x32xf32>
    %173 = arith.subf %163, %172 : vector<8x32xf32>
    %174 = arith.mulf %173, %173 : vector<8x32xf32>
    %cst_69 = arith.constant dense<0.000000e+00> : vector<8xf32>
    %175 = vector.multi_reduction <add>, %174, %cst_69 [1] : vector<8x32xf32> to vector<8xf32>
    %176 = vector.shape_cast %175 : vector<8xf32> to vector<8x1xf32>
    %cst_70 = arith.constant 3.200000e+01 : f32
    %177 = vector.broadcast %cst_70 : f32 to vector<8x1xf32>
    %178 = arith.divf %176, %177 : vector<8x1xf32>
    %179 = vector.broadcast %171 : vector<8x1xf32> to vector<8x32xf32>
    %180 = arith.subf %163, %179 : vector<8x32xf32>
    %cst_71 = arith.constant 9.99999974E-6 : f32
    %181 = vector.broadcast %cst_71 : f32 to vector<8x1xf32>
    %182 = arith.addf %178, %181 : vector<8x1xf32>
    %183 = math.rsqrt %182 : vector<8x1xf32>
    %184 = vector.broadcast %183 : vector<8x1xf32> to vector<8x32xf32>
    %185 = arith.mulf %180, %184 : vector<8x32xf32>
    %186 = vector.shape_cast %165 : vector<32xf32> to vector<1x32xf32>
    %187 = vector.broadcast %186 : vector<1x32xf32> to vector<8x32xf32>
    %188 = arith.mulf %185, %187 : vector<8x32xf32>
    %189 = vector.shape_cast %167 : vector<32xf32> to vector<1x32xf32>
    %190 = vector.broadcast %189 : vector<1x32xf32> to vector<8x32xf32>
    %191 = arith.addf %188, %190 : vector<8x32xf32>
    %192 = arith.addf %83, %191 : vector<8x32xf32>
    %c0_72 = arith.constant 0 : index
    %c0_73 = arith.constant 0 : index
    %c0_74 = arith.constant 0 : index
    %193 = vector.load %arg18[%c0_72, %c0_73, %c0_74] : memref<1x8x32xf32, #tpu.memory_space<vmem>>, vector<1x8x32xf32>
    %194 = vector.shape_cast %193 : vector<1x8x32xf32> to vector<8x32xf32>
    %195 = vector.shape_cast %192 : vector<8x32xf32> to vector<1x8x32xf32>
    tpu.vector_store %arg18[%c0_72, %c0_73, %c0_74], %195 {strides = array<i32>} : memref<1x8x32xf32, #tpu.memory_space<vmem>>, vector<1x8x32xf32>,
    return
  }
  func.func @transform_0(%arg0: i32) -> (i32, i32, i32) {
    %c0_i32 = arith.constant 0 : i32
    %c0_i32_0 = arith.constant 0 : i32
    %c0_i32_1 = arith.constant 0 : i32
    return %arg0, %c0_i32, %c0_i32_0 : i32, i32, i32
  }
  func.func @transform_1(%arg0: i32) -> (i32, i32) {
    %c0_i32 = arith.constant 0 : i32
    %c0_i32_0 = arith.constant 0 : i32
    %c0_i32_1 = arith.constant 0 : i32
    return %c0_i32, %c0_i32_0 : i32, i32
  }
  func.func @transform_2(%arg0: i32) -> (i32, i32) {
    %c0_i32 = arith.constant 0 : i32
    %c0_i32_0 = arith.constant 0 : i32
    %c0_i32_1 = arith.constant 0 : i32
    return %c0_i32, %c0_i32_0 : i32, i32
  }
  func.func @transform_3(%arg0: i32) -> (i32, i32) {
    %c0_i32 = arith.constant 0 : i32
    %c0_i32_0 = arith.constant 0 : i32
    %c0_i32_1 = arith.constant 0 : i32
    return %c0_i32, %c0_i32_0 : i32, i32
  }
  func.func @transform_4(%arg0: i32) -> (i32, i32) {
    %c0_i32 = arith.constant 0 : i32
    %c0_i32_0 = arith.constant 0 : i32
    %c0_i32_1 = arith.constant 0 : i32
    return %c0_i32, %c0_i32_0 : i32, i32
  }
  func.func @transform_5(%arg0: i32) -> (i32, i32) {
    %c0_i32 = arith.constant 0 : i32
    %c0_i32_0 = arith.constant 0 : i32
    %c0_i32_1 = arith.constant 0 : i32
    return %c0_i32, %c0_i32_0 : i32, i32
  }
  func.func @transform_6(%arg0: i32) -> (i32, i32) {
    %c0_i32 = arith.constant 0 : i32
    %c0_i32_0 = arith.constant 0 : i32
    %c0_i32_1 = arith.constant 0 : i32
    return %c0_i32, %c0_i32_0 : i32, i32
  }
  func.func @transform_7(%arg0: i32) -> (i32, i32) {
    %c0_i32 = arith.constant 0 : i32
    %c0_i32_0 = arith.constant 0 : i32
    %c0_i32_1 = arith.constant 0 : i32
    return %c0_i32, %c0_i32_0 : i32, i32
  }
  func.func @transform_8(%arg0: i32) -> (i32, i32) {
    %c0_i32 = arith.constant 0 : i32
    %c0_i32_0 = arith.constant 0 : i32
    %c0_i32_1 = arith.constant 0 : i32
    return %c0_i32, %c0_i32_0 : i32, i32
  }
  func.func @transform_9(%arg0: i32) -> (i32, i32) {
    %c0_i32 = arith.constant 0 : i32
    %c0_i32_0 = arith.constant 0 : i32
    %c0_i32_1 = arith.constant 0 : i32
    return %c0_i32, %c0_i32_0 : i32, i32
  }
  func.func @transform_10(%arg0: i32) -> (i32, i32) {
    %c0_i32 = arith.constant 0 : i32
    %c0_i32_0 = arith.constant 0 : i32
    %c0_i32_1 = arith.constant 0 : i32
    return %c0_i32, %c0_i32_0 : i32, i32
  }
  func.func @transform_11(%arg0: i32) -> (i32, i32) {
    %c0_i32 = arith.constant 0 : i32
    %c0_i32_0 = arith.constant 0 : i32
    %c0_i32_1 = arith.constant 0 : i32
    return %c0_i32, %c0_i32_0 : i32, i32
  }
  func.func @transform_12(%arg0: i32) -> (i32, i32) {
    %c0_i32 = arith.constant 0 : i32
    %c0_i32_0 = arith.constant 0 : i32
    %c0_i32_1 = arith.constant 0 : i32
    return %c0_i32, %c0_i32_0 : i32, i32
  }
  func.func @transform_13(%arg0: i32) -> (i32, i32) {
    %c0_i32 = arith.constant 0 : i32
    %c0_i32_0 = arith.constant 0 : i32
    %c0_i32_1 = arith.constant 0 : i32
    return %c0_i32, %c0_i32_0 : i32, i32
  }
  func.func @transform_14(%arg0: i32) -> (i32, i32) {
    %c0_i32 = arith.constant 0 : i32
    %c0_i32_0 = arith.constant 0 : i32
    %c0_i32_1 = arith.constant 0 : i32
    return %c0_i32, %c0_i32_0 : i32, i32
  }
  func.func @transform_15(%arg0: i32) -> (i32, i32) {
    %c0_i32 = arith.constant 0 : i32
    %c0_i32_0 = arith.constant 0 : i32
    %c0_i32_1 = arith.constant 0 : i32
    return %c0_i32, %c0_i32_0 : i32, i32
  }
  func.func @transform_16(%arg0: i32) -> (i32, i32) {
    %c0_i32 = arith.constant 0 : i32
    %c0_i32_0 = arith.constant 0 : i32
    %c0_i32_1 = arith.constant 0 : i32
    return %c0_i32, %c0_i32_0 : i32, i32
  }
  func.func @transform_17(%arg0: i32) -> (i32, i32, i32) {
    %c0_i32 = arith.constant 0 : i32
    %c0_i32_0 = arith.constant 0 : i32
    %c0_i32_1 = arith.constant 0 : i32
    return %arg0, %c0_i32, %c0_i32_0 : i32, i32, i32
  }
}

</mosaic_0001>

<bundles_post_ra>
// kernel: tpu_custom_call.1
= control target key start
LH: loop header
LB: loop body
LE: loop exit
PB: predicated region body
PF: predicated region fallthrough
CT: control target
= control target key end

     0   :  { %s2892_s0 = inlined_call_operand.vmem [shape: f32[2,8,32], index: 0, kind: input, shape index: {}]   ;;  %s2893_s1 = inlined_call_operand.vmem [shape: f32[1,32], index: 1, kind: input, shape index: {}]   ;;  %s2894_s2 = inlined_call_operand.vmem [shape: f32[1,32], index: 2, kind: input, shape index: {}]   ;;  %s2895_s3 = inlined_call_operand.vmem [shape: bf16[32,96], index: 3, kind: input, shape index: {}]   ;;  %s2896_s4 = inlined_call_operand.vmem [shape: f32[1,96], index: 4, kind: input, shape index: {}]   ;;  %s2897_s5 = inlined_call_operand.vmem [shape: bf16[32,32], index: 5, kind: input, shape index: {}]   ;;  %s2898_s6 = inlined_call_operand.vmem [shape: f32[1,32], index: 6, kind: input, shape index: {}]   ;;  %s2899_s7 = inlined_call_operand.vmem [shape: f32[1,32], index: 7, kind: input, shape index: {}]   ;;  %s2900_s8 = inlined_call_operand.vmem [shape: f32[1,32], index: 8, kind: input, shape index: {}]   ;;  %s2901_s9 = inlined_call_operand.vmem [shape: bf16[32,128], index: 9, kind: input, shape index: {}]   ;;  %s2902_s10 = inlined_call_operand.vmem [shape: f32[1,128], index: 10, kind: input, shape index: {}]   ;;  %s2903_s11 = inlined_call_operand.vmem [shape: f32[1,128], index: 11, kind: input, shape index: {}]   ;;  %s2904_s12 = inlined_call_operand.vmem [shape: f32[1,128], index: 12, kind: input, shape index: {}]   ;;  %s2905_s13 = inlined_call_operand.vmem [shape: bf16[128,32], index: 13, kind: input, shape index: {}]   ;;  %s2906_s14 = inlined_call_operand.vmem [shape: f32[1,32], index: 14, kind: input, shape index: {}]   ;;  %s2907_s15 = inlined_call_operand.vmem [shape: f32[1,32], index: 15, kind: input, shape index: {}]   ;;  %s2908_s16 = inlined_call_operand.vmem [shape: f32[1,32], index: 16, kind: input, shape index: {}]   ;;  %s2909_s17 = inlined_call_operand.hbm [shape: f32[2,8,32], index: 17, kind: output, shape index: {}]  }
   0x1   :  { %2910 = sst [smem:[#allocation8_spill]] %s2892_s0 }
   0x2   :  { %2911 = sst [smem:[#allocation9_spill]] %s2893_s1 }
   0x3   :  { %2912 = sst [smem:[#allocation10_spill]] %s2894_s2 }
   0x4   :  { %2913 = sst [smem:[#allocation11_spill]] %s2895_s3 }
   0x5   :  { %2914 = sst [smem:[#allocation12_spill]] %s2896_s4 }
   0x6   :  { %2915 = sst [smem:[#allocation13_spill]] %s2897_s5 }
   0x7   :  { %2916 = sst [smem:[#allocation14_spill]] %s2898_s6 }
   0x8   :  { %22 = vsyncpa [#allocation5], 0 }
   0x9   :  { %24 = vsyncpa [#allocation5 + $0x1], 0  ;;  %s2530_s24 = smov 0   ;;  %s2532_s25 = smov 0  }
   0xa   :  { %s2534_s26 = smov 0   ;;  %s2536_s27 = smov 0  }
   0xb LB: > { %s2551_s28 = sadd.s32 4294967295, %s2425_s27   ;;  %s2093_s29 = sadd.s32 4294967294, %s2425_s27   ;;  %s2425_s27 = sphi %s2536_s27, %s2931_s27   ;;  %s2421_s26 = sphi %s2534_s26, %s2930_s26   ;;  %s2417_s25 = sphi %s2532_s25, %s2929_s25   ;;  %s2413_s24 = sphi %s2530_s24, %s2928_s24  }
   0xc   : > { %s2555_s0 = sadd.s32 1, %s2425_s27   ;;  %s399_s30 = sadd.s32 1, %s2421_s26 }
   0xd   : > { %s396_s18 = ssub.s32 %s2425_s27, %s2555_s0  ;;  %p409_p0 = scmp.ne.s32.totalorder %s2421_s26, %s2417_s25 }
   0xe   : > { %p397_p1 = scmp.eq.s32.totalorder %s396_s18, 0  ;;  %p410_p2 = scmp.eq.s32.totalorder %s2551_s28, 1 }
   0xf   : > { %p415_p3 = scmp.ne.s32.totalorder %s2417_s25, %s2413_s24  ;;  %p416_p4 = scmp.eq.s32.totalorder %s2093_s29, 1 }
  0x10   : > { %s2566_s19 = scalar_select %p397_p1, %s2421_s26, %s399_s30  }
  0x11   : > { %p2568_p5 = por %p410_p2, %p409_p0  ;;  %p2572_p6 = por %p416_p4, %p415_p3 }
  0x12   : > { %2917 = sst [smem:[#allocation7_spill]] %s2566_s19  ;;  %p2096_p7 = scmp.ge.s32.totalorder %s2425_s27, 1 }
  0x13   : > { %p489_p8 = scmp.lt.s32.totalorder %s2425_s27, 3 }
  0x15   : > { %p490_p9 = pnand %p2096_p7, %p489_p8 }
  0x16   : > { %p540_p10 = scmp.lt.s32.totalorder (!%p490_p9), %s2551_s28, 1  ;;  %s2920_s30 = sld [smem:[#allocation8_spill]] (!%p490_p9) }
  0x17   : > { %493 = sbr.rel (%p490_p9) target bundleno = 3262 (0xcbe), region = 88  ;;  %s2921_s3 = sld [smem:[#allocation11_spill]] (!%p490_p9) }
  0x18   : > { %s2923_s2 = sld [smem:[#allocation10_spill]] (!%p490_p9)  ;;  %s2429_s19 = smov (!%p490_p9), 104  }
  0x19   : > { %s2924_s4 = sld [smem:[#allocation12_spill]] (!%p490_p9)  ;;  %s2430_s29 = smov (!%p490_p9), 120  }
  0x1a   : > { %s2925_s5 = sld [smem:[#allocation13_spill]] (!%p490_p9) }
  0x1b   : > { %s2926_s6 = sld [smem:[#allocation14_spill]] (!%p490_p9) }
  0x1c   : > { %s541_s21 = scalar_select %p540_p10, %s2551_s28, 1  ;;  %vm548_vm0 = vcmask 261120   ;;  %v2427_v8 = vmov 0.0   ;;  %vm2428_vm1 = vmmov 0   ;;  %v2433_v31 = vmov 1983009808  }
  0x1d   : > { %v2325_v7 = vld [vmem:[%s2921_s3 + $0x8] sm:$0xff]   ;;  %2182 = vmatprep.subr.bf16.mxu0 %v2427_v8  ;;  %2186 = vmatprep.mubr.msk.bf16.mxu0 %vm2428_vm1, %v2427_v8  ;;  %v2326_v9 = vld [vmem:[%s2921_s3] sm:$0xff]   ;;  %v667_v32 = vunpack.c.l.s4 %v2433_v31  ;;  %v669_v33 = vlaneseq  ;;  %v2434_v35 = vmov 1934713408   ;;  %vm1107_vm2 = vcmask 64512  }
  0x1e   : > { %s2098_s22 = sshll.u32 %s541_s21, 3  ;;  %2183 = vmatpush3.bf16.msra.mxu0 %v2325_v7  ;;  %2202 = vmatprep.subr.bf16.mxu1 %v2427_v8  ;;  %v2100_v16 = vld [vmem:[%s2923_s2] ss:$0 sm:$0xff]  ;;  %v699_v36 = vunpack.c.l.s4 %v2434_v35  ;;  %s2435_s21 = smov 64   ;;  %vm1343_vm3 = vcmask 1043456   ;;  %vm1674_vm4 = vcmask 130048  }
  0x1f   : > { %s543_s18 = scalar_lea.vmem %s2920_s30, %s2098_s22  ;;  %2184 = vmatprep.subr.bf16.mxu0 %v2427_v8  ;;  %2204 = vmatprep.mubr.msk.bf16.mxu1 %vm2428_vm1, %v2427_v8  ;;  %s2922_s30 = sld [smem:[#allocation9_spill]]  ;;  %v2101_v20 = vld [vmem:[%s2924_s4] ss:$0 sm:$0xff]  ;;  %v668_v37 = vunpack.c.0.s8 %v667_v32  ;;  %v670_v38 = vshrl.u32 %v669_v33, 7  ;;  %vm1676_vm5 = vcmask 195584  }
  0x20   : > { %v2583_v0 = vld [vmem:[%s543_s18] sm:$0xff]  ;;  %s2432_s18 = smov 96   ;;  %v700_v40 = vunpack.c.0.s8 %v699_v36  ;;  %s2439_s22 = smov [#allocation4]  }
  0x21   : > { %v549_v1 = vsel %vm548_vm0, %v2583_v0, 0.0  ;;  %v2632_v41 = vsub.s32 %v668_v37, %v670_v38 }
  0x22   : > { %550 = vadd.xlane.f32.xlu0 %v549_v1  ;;  %2185 = vmatpush3.bf16.msra.mxu0 %v2326_v9  ;;  %v2634_v47 = vsub.s32 %v700_v40, %v670_v38 }
  0x23   : > { %2190 = vmatprep.subr.bf16.mxu0 %v2427_v8 }
  0x25   : > { %v2099_v14 = vld [vmem:[%s2922_s30] ss:$0 sm:$0xff]  ;;  %s2431_s30 = smov 112  }
  0xab   : > { %v551_v2 = vpop.xlane.xlu0 %550 }
  0xac   : > { %v553_v3 = vmul.f32 0.03125, %v551_v2 }
  0xae   : > { %v554_v4 = vsub.f32 %v2583_v0, %v553_v3 }
  0xb0   : > { %v555_v5 = vmul.f32 %v554_v4, %v554_v4 }
  0xb2   : > { %v556_v6 = vsel %vm548_vm0, %v555_v5, 0.0 }
  0xb3   : > { %557 = vadd.xlane.f32.xlu0 %v556_v6 }
 0x13c   : > { %v558_v10 = vpop.xlane.xlu0 %557 }
 0x13d   : > { %v559_v11 = vmul.f32 0.03125, %v558_v10 }
 0x13f   : > { %v560_v12 = vadd.f32 1e-05, %v559_v11 }
 0x141   : > { %2339 = vrsqrt.f32 %v560_v12 }
 0x14e   : > { %v2340_v13 = vpop.eup %2339 }
 0x14f   : > { %v562_v15 = vmul.f32 %v2340_v13, %v554_v4 }
 0x151   : > { %v569_v17 = vmul.f32 %v2099_v14, %v562_v15 }
 0x153   : > { %v576_v18 = vadd.f32 %v2100_v16, %v569_v17 }
 0x155   : > { %v577_v19 = vpack.c.bf16 %v576_v18, %v576_v18 }
 0x157   : > { %2187 = vmatmul.mubr.msk.bf16.vlgmr.msra.gmra.mxu0 %vm548_vm0, %v577_v19 }
 0x158   : > { %2192 = vmatprep.mubr.msk.bf16.mxu0 %vm2428_vm1, %v2427_v8 }
 0x217   : > { %v638_v21 = vpop.f32.mrf.mxu0 }
 0x218   : > { %v2615_v22 = vadd.f32 %v2101_v20, %v638_v21 }
 0x219   : > { %v2188_v23 = vpop.f32.mrf.mxu0 }
 0x21a   : > { %644 = vst.msk [vmem:[#allocation2] sm:$0xff] %vm548_vm0, %v2615_v22  ;;  %650 = vrot.lane.b32.xlu0 %v2615_v22, %s2429_s19  ;;  %646 = vrot.lane.b32.xlu1 %v2615_v22, %s2430_s29 }
 0x21b   : > { %v641_v24 = vpop.f32.mrf.mxu0 }
 0x21d   : > { %v2189_v25 = vpop.f32.mrf.mxu0 }
 0x21e   : > { %648 = vrot.lane.b32.xlu1 %v2615_v22, %s2431_s30 }
 0x221   : > { %v956_v26 = vld [vmem:[#allocation2] sm:$0xff] }
 0x222   : > { %652 = vrot.lane.b32.xlu1 %v2615_v22, %s2432_s18  ;;  %964 = vrot.lane.b32.xlu0 %v956_v26, %s2429_s19  ;;  %s2145_s19 = sshll.u32 %s2551_s28, 7  ;;  %s2369_s28 = sshll.u32 %s2439_s22, 4  ;;  %s2370_s28 = int_to_ptr.vmem [resolvable:$false] %s2369_s28 }
 0x28c   : > { %v2623_v27 = vpop.permute.xlu1 %646  ;;  %v2629_v29 = vpop.permute.xlu0 %650 }
 0x28d   : > { %654 = vrot.lane.b32.xlu1 %v2623_v27, %s2432_s18 }
 0x290   : > { %v2626_v28 = vpop.permute.xlu1 %648 }
 0x291   : > { %656 = vrot.lane.b32.xlu1 %v2626_v28, %s2432_s18 }
 0x294   : > { %v653_v30 = vpop.permute.xlu1 %652  ;;  %v965_v57 = vpop.permute.xlu0 %964 }
 0x295   : > { %658 = vrot.lane.b32.xlu1 %v2629_v29, %s2432_s18  ;;  %s2437_s18 = smov 8  }
 0x299   : > { %958 = vrot.lane.b32.xlu1 %v956_v26, %s2430_s29  ;;  %s537_s29 = sand.u32 1, %s2417_s25  }
 0x29d   : > { %961 = vrot.lane.b32.xlu1 %v956_v26, %s2431_s30  ;;  %s2436_s30 = smov 16  }
 0x2ff   : > { %v655_v34 = vpop.permute.xlu1 %654 }
 0x303   : > { %v657_v39 = vpop.permute.xlu1 %656 }
 0x304   : > { %v664_v42 = vcombine.low %v653_v30, %v657_v39  ;;  %v665_v43 = vcombine.high %v653_v30, %v657_v39 }
 0x306   : > { %v672_v48 = vrot.slane %v664_v42, %v2632_v41  ;;  %v679_v49 = vrot.slane %v665_v43, %v2632_v41 }
 0x307   : > { %v659_v44 = vpop.permute.xlu1 %658 }
 0x308   : > { %v680_v45 = vcombine.low %v655_v34, %v659_v44  ;;  %v681_v46 = vcombine.high %v655_v34, %v659_v44 }
 0x30a   : > { %v688_v50 = vrot.slane %v680_v45, %v2632_v41  ;;  %v695_v51 = vrot.slane %v681_v46, %v2632_v41 }
 0x30b   : > { %v959_v52 = vpop.permute.xlu1 %958 }
 0x30c   : > { %v696_v53 = vcombine.low %v672_v48, %v688_v50  ;;  %v697_v54 = vcombine.high %v672_v48, %v688_v50  ;;  %v712_v55 = vcombine.low %v679_v49, %v695_v51  ;;  %v713_v56 = vcombine.high %v679_v49, %v695_v51 }
 0x30d   : > { %v983_v62 = vcombine.low %v959_v52, %v965_v57  ;;  %v984_v63 = vcombine.high %v959_v52, %v965_v57 }
 0x30e   : > { %v704_v58 = vrot.slane %v696_v53, %v2634_v47  ;;  %v711_v59 = vrot.slane %v697_v54, %v2634_v47  ;;  %v720_v60 = vrot.slane %v712_v55, %v2634_v47  ;;  %v727_v61 = vrot.slane %v713_v56, %v2634_v47 }
 0x30f   : > { %v962_v1 = vpop.permute.xlu1 %961  ;;  %v991_v13 = vrot.slane %v983_v62, %v2632_v41  ;;  %v998_v14 = vrot.slane %v984_v63, %v2632_v41 }
 0x310   : > { %v732_v2 = vcombine.low %v704_v58, %v711_v59  ;;  %v2105_v3 = vcombine.high %v704_v58, %v711_v59  ;;  %v748_v4 = vcombine.low %v720_v60, %v727_v61  ;;  %v2106_v5 = vcombine.high %v720_v60, %v727_v61 }
 0x311   : > { %v967_v6 = vcombine.low %v956_v26, %v962_v1  ;;  %v968_v7 = vcombine.high %v956_v26, %v962_v1 }
 0x312   : > { %v739_v9 = vrot.slane %v732_v2, %v2632_v41  ;;  %v747_v10 = vrot.slane %v2105_v3, %v2632_v41  ;;  %v755_v11 = vrot.slane %v748_v4, %v2632_v41  ;;  %v763_v12 = vrot.slane %v2106_v5, %v2632_v41 }
 0x313   : > { %v975_v15 = vrot.slane %v967_v6, %v2632_v41  ;;  %v982_v16 = vrot.slane %v968_v7, %v2632_v41 }
 0x314   : > { %v764_v17 = vcombine.low %v739_v9, %v747_v10  ;;  %v780_v18 = vcombine.low %v755_v11, %v763_v12  ;;  %v765_v19 = vcombine.high %v739_v9, %v747_v10  ;;  %v781_v20 = vcombine.high %v755_v11, %v763_v12 }
 0x315   : > { %v999_v21 = vcombine.low %v975_v15, %v991_v13  ;;  %v1000_v23 = vcombine.high %v975_v15, %v991_v13  ;;  %v1015_v24 = vcombine.low %v982_v16, %v998_v14  ;;  %v1016_v25 = vcombine.high %v982_v16, %v998_v14 }
 0x316   : > { %v772_v26 = vrot.slane %v764_v17, %v2634_v47  ;;  %v788_v30 = vrot.slane %v780_v18, %v2634_v47  ;;  %v779_v31 = vrot.slane %v765_v19, %v2634_v47  ;;  %v795_v32 = vrot.slane %v781_v20, %v2634_v47 }
 0x317   : > { %v1007_v33 = vrot.slane %v999_v21, %v2634_v47  ;;  %v1014_v34 = vrot.slane %v1000_v23, %v2634_v47  ;;  %v1023_v35 = vrot.slane %v1015_v24, %v2634_v47  ;;  %v1030_v36 = vrot.slane %v1016_v25, %v2634_v47 }
 0x318   : > { %v796_v37 = vcombine.low %v772_v26, %v788_v30  ;;  %v798_v38 = vcombine.low %v779_v31, %v795_v32  ;;  %v797_v53 = vcombine.high %v772_v26, %v788_v30  ;;  %v799_v5 = vcombine.high %v779_v31, %v795_v32 }
 0x319   : > { %v1035_v39 = vcombine.low %v1007_v33, %v1014_v34  ;;  %v2109_v40 = vcombine.high %v1007_v33, %v1014_v34  ;;  %v1051_v42 = vcombine.low %v1023_v35, %v1030_v36  ;;  %v2110_v43 = vcombine.high %v1023_v35, %v1030_v36 }
 0x31a   : > { %v800_v44 = vpack.c.bf16 %v796_v37, %v796_v37  ;;  %v802_v45 = vpack.c.bf16 %v798_v38, %v798_v38  ;;  %v801_v63 = vpack.c.bf16 %v797_v53, %v797_v53  ;;  %v803_v7 = vpack.c.bf16 %v799_v5, %v799_v5 }
 0x31b   : > { %v1042_v46 = vrot.slane %v1035_v39, %v2632_v41  ;;  %v1050_v48 = vrot.slane %v2109_v40, %v2632_v41  ;;  %v1058_v49 = vrot.slane %v1051_v42, %v2632_v41  ;;  %v1066_v50 = vrot.slane %v2110_v43, %v2632_v41 }
 0x31c   : > { %v1112_v51 = vsel %vm1107_vm2, %v800_v44, 0  ;;  %v1204_v52 = vsel %vm1107_vm2, %v802_v45, 0  ;;  %v1158_v4 = vsel %vm1107_vm2, %v801_v63, 0  ;;  %v1250_v10 = vsel %vm1107_vm2, %v803_v7, 0 }
 0x31d   : > { %v1067_v54 = vcombine.low %v1042_v46, %v1050_v48  ;;  %v1083_v55 = vcombine.low %v1058_v49, %v1066_v50  ;;  %2191 = vmatpush3.bf16.xpose.msra.mxu0 %v1112_v51  ;;  %2203 = vmatpush3.bf16.xpose.msra.mxu1 %v1204_v52  ;;  %v1068_v56 = vcombine.high %v1042_v46, %v1050_v48 }
 0x31e   : > { %2196 = vmatprep.subr.bf16.mxu0 %v2427_v8  ;;  %v1084_v57 = vcombine.high %v1058_v49, %v1066_v50  ;;  %2214 = vmatprep.subr.bf16.mxu1 %v2427_v8 }
 0x31f   : > { %v1075_v58 = vrot.slane %v1067_v54, %v2634_v47  ;;  %v1091_v59 = vrot.slane %v1083_v55, %v2634_v47  ;;  %v1082_v60 = vrot.slane %v1068_v56, %v2634_v47 }
 0x320   : > { %v1098_v61 = vrot.slane %v1084_v57, %v2634_v47 }
 0x321   : > { %v1099_v62 = vcombine.low %v1075_v58, %v1091_v59  ;;  %v1100_v6 = vcombine.high %v1075_v58, %v1091_v59 }
 0x322   : > { %v1101_v1 = vcombine.low %v1082_v60, %v1098_v61  ;;  %v1102_v11 = vcombine.high %v1082_v60, %v1098_v61 }
 0x323   : > { %v1103_v2 = vpack.c.bf16 %v1099_v62, %v1099_v62  ;;  %v1104_v9 = vpack.c.bf16 %v1100_v6, %v1100_v6 }
 0x324   : > { %v1105_v3 = vpack.c.bf16 %v1101_v1, %v1101_v1  ;;  %v1106_v12 = vpack.c.bf16 %v1102_v11, %v1102_v11 }
 0x325   : > { %2193 = vmatmul.mubr.msk.bf16.vlgmr.msra.gmra.mxu0 %vm1107_vm2, %v1103_v2 }
 0x326   : > { %2205 = vmatmul.mubr.msk.bf16.vlgmr.msra.gmra.mxu1 %vm1107_vm2, %v1105_v3  ;;  %2197 = vmatpush3.bf16.xpose.msra.mxu0 %v1158_v4 }
 0x327   : > { %2198 = vmatprep.mubr.msk.bf16.mxu0 %vm2428_vm1, %v2427_v8  ;;  %2208 = vmatprep.subr.bf16.mxu0 %v2427_v8 }
 0x328   : > { %2216 = vmatprep.mubr.msk.bf16.mxu1 %vm2428_vm1, %v2427_v8 }
 0x32d   : > { %2199 = vmatmul.mubr.msk.bf16.vlgmr.msra.gmra.mxu0 %vm1107_vm2, %v1104_v9 }
 0x32e   : > { %2209 = vmatpush3.bf16.xpose.msra.mxu0 %v1250_v10  ;;  %2210 = vmatprep.mubr.msk.bf16.mxu0 %vm2428_vm1, %v2427_v8 }
 0x32f   : > { %2220 = vmatprep.subr.bf16.mxu0 %v2427_v8 }
 0x335   : > { %2211 = vmatmul.mubr.msk.bf16.vlgmr.msra.gmra.mxu0 %vm1107_vm2, %v1106_v12 }
 0x336   : > { %2222 = vmatprep.mubr.msk.bf16.mxu0 %vm2428_vm1, %v2427_v8 }
 0x3e5   : > { %v1148_v13 = vpop.f32.mrf.mxu0 }
 0x3e6   : > { %v1240_v14 = vpop.f32.mrf.mxu1  ;;  %v1292_v15 = vsel %vm1107_vm2, %v1148_v13, -inf }
 0x3e7   : > { %v1298_v16 = vsel %vm1107_vm2, %v1240_v14, -inf  ;;  %1293 = vmax.xlane.f32.xlu1 %v1292_v15  ;;  %v2194_v17 = vpop.f32.mrf.mxu0 }
 0x3e8   : > { %1299 = vmax.xlane.f32.xlu0 %v1298_v16  ;;  %v2206_v18 = vpop.f32.mrf.mxu1 }
 0x3e9   : > { %v1151_v19 = vpop.f32.mrf.mxu0 }
 0x3ea   : > { %v1243_v20 = vpop.f32.mrf.mxu1 }
 0x3eb   : > { %v2195_v21 = vpop.f32.mrf.mxu0 }
 0x3ec   : > { %v2207_v23 = vpop.f32.mrf.mxu1 }
 0x3ed   : > { %v1194_v24 = vpop.f32.mrf.mxu0 }
 0x3ee   : > { %v1295_v25 = vsel %vm1107_vm2, %v1194_v24, -inf }
 0x3ef   : > { %1296 = vmax.xlane.f32.xlu0 %v1295_v25  ;;  %v2200_v26 = vpop.f32.mrf.mxu0 }
 0x3f1   : > { %v1197_v30 = vpop.f32.mrf.mxu0 }
 0x3f3   : > { %v2201_v31 = vpop.f32.mrf.mxu0 }
 0x3f5   : > { %v1286_v32 = vpop.f32.mrf.mxu0 }
 0x3f6   : > { %v1301_v33 = vsel %vm1107_vm2, %v1286_v32, -inf }
 0x3f7   : > { %1302 = vmax.xlane.f32.xlu1 %v1301_v33  ;;  %v2212_v34 = vpop.f32.mrf.mxu0 }
 0x3f9   : > { %v1289_v35 = vpop.f32.mrf.mxu0 }
 0x3fb   : > { %v2213_v36 = vpop.f32.mrf.mxu0 }
 0x405   : > { %804 = vrot.lane.b32.xlu0 %v2615_v22, %s2435_s21 }
 0x408   : > { %806 = vrot.lane.b32.xlu1 %v2623_v27, %s2435_s21 }
 0x470   : > { %v1294_v37 = vpop.xlane.xlu1 %1293 }
 0x471   : > { %v1304_v38 = vsub.f32 %v1148_v13, %v1294_v37  ;;  %v1300_v40 = vpop.xlane.xlu0 %1299 }
 0x472   : > { %v1306_v51 = vsub.f32 %v1240_v14, %v1300_v40 }
 0x473   : > { %v1308_v39 = vmul.f32 1.442695, %v1304_v38 }
 0x474   : > { %v1312_v52 = vmul.f32 1.442695, %v1306_v51 }
 0x475   : > { %2341 = vpow2.f32 %v1308_v39 }
 0x478   : > { %v1297_v42 = vpop.xlane.xlu0 %1296 }
 0x479   : > { %v1305_v43 = vsub.f32 %v1194_v24, %v1297_v42 }
 0x47b   : > { %v1310_v44 = vmul.f32 1.442695, %v1305_v43 }
 0x47c   : > { %v805_v56 = vpop.permute.xlu0 %804 }
 0x47d   : > { %2343 = vpow2.f32 %v1310_v44 }
 0x480   : > { %v1303_v27 = vpop.xlane.xlu1 %1302 }
 0x481   : > { %v1307_v49 = vsub.f32 %v1286_v32, %v1303_v27 }
 0x482   : > { %v2694_v45 = vpop.eup %2341 }
 0x483   : > { %v1316_v46 = vsel %vm1107_vm2, %v2694_v45, 0.0  ;;  %v1314_v50 = vmul.f32 1.442695, %v1307_v49 }
 0x484   : > { %1317 = vadd.xlane.f32.xlu0 %v1316_v46  ;;  %v807_v57 = vpop.permute.xlu1 %806 }
 0x485   : > { %2345 = vpow2.f32 %v1314_v50 }
 0x486   : > { %2347 = vpow2.f32 %v1312_v52 }
 0x48a   : > { %v2698_v48 = vpop.eup %2343 }
 0x48b   : > { %v1319_v22 = vsel %vm1107_vm2, %v2698_v48, 0.0 }
 0x48c   : > { %1320 = vadd.xlane.f32.xlu1 %v1319_v22 }
 0x492   : > { %v2704_v53 = vpop.eup %2345 }
 0x493   : > { %v1325_v54 = vsel %vm1107_vm2, %v2704_v53, 0.0  ;;  %v2708_v55 = vpop.eup %2347 }
 0x49a   : > { %810 = vrot.lane.b32.xlu0 %v2629_v29, %s2435_s21  ;;  %v1322_v29 = vsel %vm1107_vm2, %v2708_v55, 0.0 }
 0x49d   : > { %808 = vrot.lane.b32.xlu1 %v2626_v28, %s2435_s21  ;;  %s2438_s21 = smov 24  }
 0x4b9   : > { %1326 = vadd.xlane.f32.xlu0 %v1325_v54 }
 0x4c1   : > { %1323 = vadd.xlane.f32.xlu1 %v1322_v29 }
 0x50d   : > { %v1318_v28 = vpop.xlane.xlu0 %1317 }
 0x50e   : > { %2349 = vrcp.f32 %v1318_v28 }
 0x511   : > { %v811_v58 = vpop.permute.xlu0 %810 }
 0x512   : > { %v832_v60 = vcombine.low %v807_v57, %v811_v58  ;;  %v833_v61 = vcombine.high %v807_v57, %v811_v58 }
 0x514   : > { %v840_v2 = vrot.slane %v832_v60, %v2632_v41  ;;  %v847_v3 = vrot.slane %v833_v61, %v2632_v41 }
 0x515   : > { %v1321_v59 = vpop.xlane.xlu1 %1320 }
 0x516   : > { %2351 = vrcp.f32 %v1321_v59 }
 0x519   : > { %v809_v62 = vpop.permute.xlu1 %808 }
 0x51a   : > { %v816_v63 = vcombine.low %v805_v56, %v809_v62  ;;  %v817_v1 = vcombine.high %v805_v56, %v809_v62 }
 0x51b   : > { %v2350_v31 = vpop.eup %2349 }
 0x51c   : > { %v824_v4 = vrot.slane %v816_v63, %v2632_v41  ;;  %v831_v5 = vrot.slane %v817_v1, %v2632_v41  ;;  %v1332_v44 = vmul.f32 %v2350_v31, %v2694_v45 }
 0x51e   : > { %v848_v6 = vcombine.low %v824_v4, %v840_v2  ;;  %v849_v7 = vcombine.high %v824_v4, %v840_v2  ;;  %v864_v9 = vcombine.low %v831_v5, %v847_v3  ;;  %v865_v10 = vcombine.high %v831_v5, %v847_v3 }
 0x51f   : > { %v1336_v51 = vpack.c.bf16 %v1332_v44, %v1332_v44 }
 0x520   : > { %v856_v11 = vrot.slane %v848_v6, %v2634_v47  ;;  %v863_v12 = vrot.slane %v849_v7, %v2634_v47  ;;  %v872_v13 = vrot.slane %v864_v9, %v2634_v47  ;;  %v879_v14 = vrot.slane %v865_v10, %v2634_v47 }
 0x522   : > { %v884_v15 = vcombine.low %v856_v11, %v863_v12  ;;  %v2107_v16 = vcombine.high %v856_v11, %v863_v12  ;;  %v900_v17 = vcombine.low %v872_v13, %v879_v14  ;;  %v2108_v18 = vcombine.high %v872_v13, %v879_v14 }
 0x523   : > { %v2352_v36 = vpop.eup %2351 }
 0x524   : > { %v891_v19 = vrot.slane %v884_v15, %v2632_v41  ;;  %v899_v20 = vrot.slane %v2107_v16, %v2632_v41  ;;  %v907_v21 = vrot.slane %v900_v17, %v2632_v41  ;;  %v915_v23 = vrot.slane %v2108_v18, %v2632_v41 }
 0x525   : > { %v1333_v46 = vmul.f32 %v2352_v36, %v2698_v48 }
 0x526   : > { %v916_v24 = vcombine.low %v891_v19, %v899_v20  ;;  %v932_v25 = vcombine.low %v907_v21, %v915_v23  ;;  %v917_v26 = vcombine.high %v891_v19, %v899_v20  ;;  %v933_v30 = vcombine.high %v907_v21, %v915_v23 }
 0x527   : > { %v1337_v52 = vpack.c.bf16 %v1333_v46, %v1333_v46 }
 0x528   : > { %v924_v32 = vrot.slane %v916_v24, %v2634_v47  ;;  %v940_v33 = vrot.slane %v932_v25, %v2634_v47  ;;  %v931_v34 = vrot.slane %v917_v26, %v2634_v47  ;;  %v947_v35 = vrot.slane %v933_v30, %v2634_v47 }
 0x52a   : > { %v948_v37 = vcombine.low %v924_v32, %v940_v33  ;;  %v949_v38 = vcombine.high %v924_v32, %v940_v33  ;;  %v950_v39 = vcombine.low %v931_v34, %v947_v35  ;;  %v951_v40 = vcombine.high %v931_v34, %v947_v35 }
 0x52c   : > { %v952_v42 = vpack.c.bf16 %v948_v37, %v948_v37  ;;  %v953_v43 = vpack.c.bf16 %v949_v38, %v949_v38  ;;  %v954_v49 = vpack.c.bf16 %v950_v39, %v950_v39  ;;  %v955_v50 = vpack.c.bf16 %v951_v40, %v951_v40 }
 0x52e   : > { %v1345_v22 = vsel %vm1343_vm3, %v952_v42, 0  ;;  %v1391_v27 = vsel %vm1343_vm3, %v953_v43, 0  ;;  %v1437_v45 = vsel %vm1343_vm3, %v954_v49, 0  ;;  %v1483_v48 = vsel %vm1343_vm3, %v955_v50, 0  ;;  %v2327_v42 = vld [vmem:[%s2925_s5 + $0x8] sm:$0xff]  }
 0x52f   : > { %2215 = vmatpush3.bf16.msra.mxu1 %v1345_v22  ;;  %2221 = vmatpush3.bf16.msra.mxu0 %v1391_v27  ;;  %v2328_v27 = vld [vmem:[%s2925_s5] sm:$0xff]  }
 0x530   : > { %2226 = vmatprep.subr.bf16.mxu1 %v2427_v8  ;;  %2232 = vmatprep.subr.bf16.mxu0 %v2427_v8 }
 0x532   : > { %2217 = vmatmul.mubr.msk.bf16.vlgmr.msra.gmra.mxu1 %vm1107_vm2, %v1336_v51  ;;  %2223 = vmatmul.mubr.msk.bf16.vlgmr.msra.gmra.mxu0 %vm1107_vm2, %v1337_v52 }
 0x533   : > { %2227 = vmatpush3.bf16.msra.mxu1 %v1437_v45  ;;  %2233 = vmatpush3.bf16.msra.mxu0 %v1483_v48 }
 0x534   : > { %2234 = vmatprep.mubr.msk.bf16.mxu0 %vm2428_vm1, %v2427_v8  ;;  %2228 = vmatprep.mubr.msk.bf16.mxu1 %vm2428_vm1, %v2427_v8 }
 0x535   : > { %2238 = vmatprep.subr.bf16.mxu1 %v2427_v8  ;;  %2246 = vmatprep.subr.bf16.mxu0 %v2427_v8 }
 0x542   : > { %v1327_v54 = vpop.xlane.xlu0 %1326 }
 0x543   : > { %2353 = vrcp.f32 %v1327_v54 }
 0x54a   : > { %v1324_v29 = vpop.xlane.xlu1 %1323 }
 0x54b   : > { %2355 = vrcp.f32 %v1324_v29 }
 0x550   : > { %v2354_v56 = vpop.eup %2353 }
 0x551   : > { %v1335_v28 = vmul.f32 %v2354_v56, %v2704_v53 }
 0x553   : > { %v1339_v57 = vpack.c.bf16 %v1335_v28, %v1335_v28 }
 0x555   : > { %2235 = vmatmul.mubr.msk.bf16.vlgmr.msra.gmra.mxu0 %vm1107_vm2, %v1339_v57 }
 0x556   : > { %2250 = vmatprep.mubr.msk.bf16.mxu0 %vm2428_vm1, %v2427_v8 }
 0x558   : > { %v2356_v58 = vpop.eup %2355 }
 0x559   : > { %v1334_v59 = vmul.f32 %v2356_v58, %v2708_v55 }
 0x55b   : > { %v1338_v60 = vpack.c.bf16 %v1334_v59, %v1334_v59 }
 0x55d   : > { %2229 = vmatmul.mubr.msk.bf16.vlgmr.msra.gmra.mxu1 %vm1107_vm2, %v1338_v60 }
 0x55e   : > { %2242 = vmatprep.mubr.msk.bf16.mxu1 %vm2428_vm1, %v2427_v8  ;;  %2239 = vmatpush3.bf16.msra.mxu1 %v2327_v42  ;;  %v2337_v42 = vld [vmem:[%s2905_s13 + $0x8] sm:$0xff]  }
 0x55f   : > { %2240 = vmatprep.subr.bf16.mxu1 %v2427_v8 }
 0x562   : > { %2241 = vmatpush3.bf16.msra.mxu1 %v2328_v27 }
 0x563   : > { %2254 = vmatprep.subr.bf16.mxu1 %v2427_v8 }
 0x5f2   : > { %v1381_v61 = vpop.f32.mrf.mxu1  ;;  %v1427_v62 = vpop.f32.mrf.mxu0 }
 0x5f4   : > { %v2218_v63 = vpop.f32.mrf.mxu1  ;;  %v2224_v1 = vpop.f32.mrf.mxu0 }
 0x5f6   : > { %v1384_v53 = vpop.f32.mrf.mxu1  ;;  %v1430_v2 = vpop.f32.mrf.mxu0 }
 0x5f8   : > { %v2219_v3 = vpop.f32.mrf.mxu1  ;;  %v2225_v4 = vpop.f32.mrf.mxu0 }
 0x615   : > { %v1519_v5 = vpop.f32.mrf.mxu0 }
 0x616   : > { %v1541_v10 = vcombine.low %v1427_v62, %v1519_v5  ;;  %v1542_v55 = vcombine.high %v1427_v62, %v1519_v5 }
 0x617   : > { %v2236_v6 = vpop.f32.mrf.mxu0 }
 0x618   : > { %v1549_v15 = vrot.slane %v1541_v10, %v2632_v41  ;;  %v1556_v16 = vrot.slane %v1542_v55, %v2632_v41  ;;  %v2329_v55 = vld [vmem:[%s2901_s9 + $0x8] sm:$0xff]  }
 0x619   : > { %v1522_v7 = vpop.f32.mrf.mxu0  ;;  %2247 = vmatpush3.bf16.msra.mxu0 %v2329_v55  ;;  %v2143_v55 = vld [vmem:[%s2908_s16] ss:$0 sm:$0xff] }
 0x61a   : > { %2248 = vmatprep.subr.bf16.mxu0 %v2427_v8 }
 0x61b   : > { %v2237_v9 = vpop.f32.mrf.mxu0 }
 0x61d   : > { %v1473_v11 = vpop.f32.mrf.mxu1 }
 0x61e   : > { %v1525_v12 = vcombine.low %v1381_v61, %v1473_v11  ;;  %v1526_v13 = vcombine.high %v1381_v61, %v1473_v11  ;;  %v2121_v61 = vld [vmem:[%s2926_s6] ss:$0 sm:$0xff]  ;;  %s2032_s6 = scalar_lea.hbm %s2909_s17, %s2145_s19 }
 0x61f   : > { %v2230_v14 = vpop.f32.mrf.mxu1 }
 0x620   : > { %v1533_v17 = vrot.slane %v1525_v12, %v2632_v41  ;;  %v1540_v18 = vrot.slane %v1526_v13, %v2632_v41 }
 0x621   : > { %v1476_v19 = vpop.f32.mrf.mxu1 }
 0x622   : > { %v1557_v20 = vcombine.low %v1533_v17, %v1549_v15  ;;  %v1558_v21 = vcombine.high %v1533_v17, %v1549_v15  ;;  %v1573_v23 = vcombine.low %v1540_v18, %v1556_v16  ;;  %v1574_v24 = vcombine.high %v1540_v18, %v1556_v16  ;;  %v2125_v15 = vld [vmem:[%s2899_s7] ss:$0 sm:$0xff] }
 0x623   : > { %v2231_v25 = vpop.f32.mrf.mxu1  ;;  %v2126_v17 = vld [vmem:[%s2900_s8] ss:$0 sm:$0xff] }
 0x624   : > { %v1565_v26 = vrot.slane %v1557_v20, %v2634_v47  ;;  %v1572_v30 = vrot.slane %v1558_v21, %v2634_v47  ;;  %v1581_v31 = vrot.slane %v1573_v23, %v2634_v47  ;;  %v1588_v32 = vrot.slane %v1574_v24, %v2634_v47  ;;  %v2127_v21 = vld [vmem:[%s2902_s10] ss:$0 sm:$0xff] }
 0x626   : > { %v1593_v33 = vcombine.low %v1565_v26, %v1572_v30  ;;  %v2119_v34 = vcombine.high %v1565_v26, %v1572_v30  ;;  %v1609_v35 = vcombine.low %v1581_v31, %v1588_v32  ;;  %v2120_v36 = vcombine.high %v1581_v31, %v1588_v32 }
 0x628   : > { %v1600_v37 = vrot.slane %v1593_v33, %v2632_v41  ;;  %v1608_v38 = vrot.slane %v2119_v34, %v2632_v41  ;;  %v1616_v39 = vrot.slane %v1609_v35, %v2632_v41  ;;  %v1624_v40 = vrot.slane %v2120_v36, %v2632_v41  ;;  %v2331_v35 = vld [vmem:[%s2905_s13 + $0x38] sm:$0xff]   ;;  %v2332_v36 = vld [vmem:[%s2905_s13 + $0x30] sm:$0xff]  }
 0x62a   : > { %v1626_v43 = vcombine.high %v1600_v37, %v1608_v38  ;;  %v1642_v44 = vcombine.high %v1616_v39, %v1624_v40  ;;  %v1625_v46 = vcombine.low %v1600_v37, %v1608_v38  ;;  %v1641_v22 = vcombine.low %v1616_v39, %v1624_v40  ;;  %v2333_v37 = vld [vmem:[%s2905_s13 + $0x28] sm:$0xff]   ;;  %v2334_v38 = vld [vmem:[%s2905_s13 + $0x20] sm:$0xff]   ;;  %v2335_v39 = vld [vmem:[%s2905_s13 + $0x18] sm:$0xff]  }
 0x62b   : > { %v2336_v40 = vld [vmem:[%s2905_s13 + $0x10] sm:$0xff]  }
 0x62c   : > { %v1640_v49 = vrot.slane %v1626_v43, %v2634_v47  ;;  %v1656_v50 = vrot.slane %v1642_v44, %v2634_v47  ;;  %v1633_v41 = vrot.slane %v1625_v46, %v2634_v47  ;;  %v1649_v51 = vrot.slane %v1641_v22, %v2634_v47  ;;  %v2338_v43 = vld [vmem:[%s2905_s13] sm:$0xff]  }
 0x62e   : > { %v1659_v52 = vcombine.low %v1640_v49, %v1656_v50  ;;  %v1658_v45 = vcombine.high %v1633_v41, %v1649_v51  ;;  %v1657_v48 = vcombine.low %v1633_v41, %v1649_v51  ;;  %v1660_v54 = vcombine.high %v1640_v49, %v1656_v50  ;;  %v2131_v49 = vld [vmem:[%s2903_s11] ss:$0 sm:$0xff] }
 0x62f   : > { %v2132_v41 = vld [vmem:[%s2904_s12] ss:$0 sm:$0xff] }
 0x630   : > { %1666 = vrot.lane.b32.xlu1 %v1659_v52, %s2436_s30  ;;  %1662 = vrot.lane.b32.xlu0 %v1658_v45, %s2437_s18  ;;  %s2097_s30 = sshll.u32 %s537_s29, 3  ;;  %s2021_s18 = scalar_lea.sflag [#allocation5], %s537_s29 }
 0x631   : > { %s539_s2 = scalar_lea.vmem [#allocation4], %s2097_s30  ;;  %s2371_s30 = scalar_lea.vmem %s2370_s28, 256 }
 0x632   : > { %s2034_s3 = sshll.u32 %s539_s2, 4  ;;  %s2035_s3 = int_to_ptr.vmem [resolvable:$true] %s2034_s3 }
 0x633   : > { %p2372_p0 = scmp.lt.s32.totalorder %s2035_s3, %s2370_s28 }
 0x634   : > { %1670 = vrot.lane.b32.xlu1 %v1660_v54, %s2438_s21  ;;  %s2365_s21 = scalar_lea.vmem %s2035_s3, 128 }
 0x635   : > { %p2366_p11 = scmp.ne.s32.totalorder %s2035_s3, %s2365_s21  ;;  %p2373_p1 = scmp.lt.s32.totalorder %s2371_s30, %s2365_s21 }
 0x637   : > { %p2367_p12 = pnand %p2366_p11, %p2568_p5  ;;  %p2374_p2 = por %p2373_p1, %p2372_p0 }
 0x639   : > { %p2368_p13 = pneg %p2367_p12 }
 0x63b   : > { %p2375_p3 = pnand %p2374_p2, %p2368_p13 }
 0x6a2   : > { %v1667_v29 = vpop.permute.xlu1 %1666  ;;  %v1663_v56 = vpop.permute.xlu0 %1662 }
 0x6a3   : > { %v1673_v28 = vsel %vm1107_vm2, %v1657_v48, %v1663_v56 }
 0x6a4   : > { %v1675_v57 = vsel %vm1674_vm4, %v1673_v28, %v1667_v29  ;;  %v2133_v28 = vld [vmem:[%s2906_s14] ss:$0 sm:$0xff] }
 0x6a6   : > { %v1671_v47 = vpop.permute.xlu1 %1670 }
 0x6a7   : > { %v1677_v58 = vsel %vm1676_vm5, %v1675_v57, %v1671_v47 }
 0x6a8   : > { %1678 = vst.msk [vmem:[#allocation3] sm:$0xff] %vm548_vm0, %v1677_v58 }
 0x6af   : > { %v1679_v59 = vld [vmem:[#allocation3] sm:$0xff] }
 0x6b0   : > { %v1680_v60 = vpack.c.bf16 %v1679_v59, %v1679_v59 }
 0x6b2   : > { %2243 = vmatmul.mubr.msk.bf16.vlgmr.msra.gmra.mxu1 %vm548_vm0, %v1680_v60 }
 0x6b3   : > { %2270 = vmatprep.mubr.msk.bf16.mxu1 %vm2428_vm1, %v2427_v8  ;;  %2255 = vmatpush3.bf16.msra.mxu1 %v2331_v35 }
 0x6b4   : > { %2256 = vmatprep.subr.bf16.mxu1 %v2427_v8 }
 0x6b7   : > { %2257 = vmatpush3.bf16.msra.mxu1 %v2332_v36 }
 0x6b8   : > { %2258 = vmatprep.subr.bf16.mxu1 %v2427_v8 }
 0x6bb   : > { %2259 = vmatpush3.bf16.msra.mxu1 %v2333_v37 }
 0x6bc   : > { %2260 = vmatprep.subr.bf16.mxu1 %v2427_v8 }
 0x6bf   : > { %2261 = vmatpush3.bf16.msra.mxu1 %v2334_v38 }
 0x6c0   : > { %2262 = vmatprep.subr.bf16.mxu1 %v2427_v8 }
 0x6c3   : > { %2263 = vmatpush3.bf16.msra.mxu1 %v2335_v39 }
 0x6c4   : > { %2264 = vmatprep.subr.bf16.mxu1 %v2427_v8 }
 0x6c7   : > { %2265 = vmatpush3.bf16.msra.mxu1 %v2336_v40 }
 0x6c8   : > { %2266 = vmatprep.subr.bf16.mxu1 %v2427_v8 }
 0x6cb   : > { %2267 = vmatpush3.bf16.msra.mxu1 %v2337_v42 }
 0x6cc   : > { %2268 = vmatprep.subr.bf16.mxu1 %v2427_v8 }
 0x6cf   : > { %2269 = vmatpush3.bf16.msra.mxu1 %v2338_v43 }
 0x772   : > { %v1741_v62 = vpop.f32.mrf.mxu1 }
 0x773   : > { %v1742_v63 = vadd.f32 %v2121_v61, %v1741_v62 }
 0x774   : > { %v2244_v1 = vpop.f32.mrf.mxu1 }
 0x775   : > { %v2785_v53 = vadd.f32 %v1742_v63, %v2583_v0  ;;  %v2330_v0 = vld [vmem:[%s2901_s9] sm:$0xff]  }
 0x776   : > { %v1744_v2 = vpop.f32.mrf.mxu1  ;;  %2249 = vmatpush3.bf16.msra.mxu0 %v2330_v0 }
 0x777   : > { %v1750_v3 = vsel %vm548_vm0, %v2785_v53, 0.0 }
 0x778   : > { %1751 = vadd.xlane.f32.xlu0 %v1750_v3  ;;  %v2245_v4 = vpop.f32.mrf.mxu1 }
 0x801   : > { %v1752_v5 = vpop.xlane.xlu0 %1751 }
 0x802   : > { %v1753_v6 = vmul.f32 0.03125, %v1752_v5 }
 0x804   : > { %v1754_v7 = vsub.f32 %v2785_v53, %v1753_v6 }
 0x806   : > { %v1755_v9 = vmul.f32 %v1754_v7, %v1754_v7 }
 0x808   : > { %v1756_v10 = vsel %vm548_vm0, %v1755_v9, 0.0  ;;  %v2142_v9 = vld [vmem:[%s2907_s15] ss:$0 sm:$0xff] }
 0x809   : > { %1757 = vadd.xlane.f32.xlu1 %v1756_v10 }
 0x892   : > { %v1758_v11 = vpop.xlane.xlu1 %1757 }
 0x893   : > { %v1759_v12 = vmul.f32 0.03125, %v1758_v11 }
 0x895   : > { %v1760_v13 = vadd.f32 1e-05, %v1759_v12 }
 0x897   : > { %2357 = vrsqrt.f32 %v1760_v13 }
 0x8a4   : > { %v2358_v14 = vpop.eup %2357 }
 0x8a5   : > { %v1762_v16 = vmul.f32 %v2358_v14, %v1754_v7 }
 0x8a7   : > { %v1769_v18 = vmul.f32 %v2125_v15, %v1762_v16 }
 0x8a9   : > { %v1776_v19 = vadd.f32 %v2126_v17, %v1769_v18 }
 0x8ab   : > { %v1777_v20 = vpack.c.bf16 %v1776_v19, %v1776_v19 }
 0x8ad   : > { %2251 = vmatmul.mubr.msk.bf16.vlgmr.msra.gmra.mxu0 %vm548_vm0, %v1777_v20 }
 0x96d   : > { %v1838_v23 = vpop.f32.mrf.mxu0 }
 0x96e   : > { %v1839_v24 = vadd.f32 %v2127_v21, %v1838_v23 }
 0x96f   : > { %v2252_v25 = vpop.f32.mrf.mxu0 }
 0x970   : > { %1846 = vadd.xlane.f32.xlu0 %v1839_v24 }
 0x971   : > { %v1841_v26 = vpop.f32.mrf.mxu0 }
 0x973   : > { %v2253_v30 = vpop.f32.mrf.mxu0 }
 0x9f9   : > { %v1847_v31 = vpop.xlane.xlu0 %1846 }
 0x9fa   : > { %v1849_v32 = vmul.f32 0.0078125, %v1847_v31 }
 0x9fc   : > { %v1850_v33 = vsub.f32 %v1839_v24, %v1849_v32 }
 0x9fe   : > { %v1851_v34 = vmul.f32 %v1850_v33, %v1850_v33 }
 0xa00   : > { %1852 = vadd.xlane.f32.xlu0 %v1851_v34 }
 0xa89   : > { %v1853_v44 = vpop.xlane.xlu0 %1852 }
 0xa8a   : > { %v1854_v46 = vmul.f32 0.0078125, %v1853_v44 }
 0xa8c   : > { %v1855_v22 = vadd.f32 1e-05, %v1854_v46 }
 0xa8e   : > { %2359 = vrsqrt.f32 %v1855_v22 }
 0xa9b   : > { %v2360_v27 = vpop.eup %2359 }
 0xa9c   : > { %v1857_v50 = vmul.f32 %v2360_v27, %v1850_v33 }
 0xa9e   : > { %v1864_v51 = vmul.f32 %v2131_v49, %v1857_v50 }
 0xaa0   : > { %v1871_v52 = vadd.f32 %v2132_v41, %v1864_v51 }
 0xaa2   : > { %v1873_v45 = vmul.f32 0.70710677, %v1871_v52  ;;  %v1872_v48 = vmul.f32 0.5, %v1871_v52 }
 0xaa4   : > { %2361 = verf.f32 %v1873_v45 }
 0xab1   : > { %v2362_v8 = vpop.eup %2361 }
 0xab2   : > { %v1875_v54 = vadd.f32 1.0, %v2362_v8 }
 0xab4   : > { %v1876_v29 = vmul.f32 %v1875_v54, %v1872_v48 }
 0xab6   : > { %v1877_v56 = vpack.c.bf16 %v1876_v29, %v1876_v29 }
 0xab8   : > { %2271 = vmatmul.mubr.bf16.vlgmr.msra.gmra.mxu1 %v1877_v56 }
 0xb78   : > { %v1983_v47 = vpop.f32.mrf.mxu1 }
 0xb79   : > { %v1984_v57 = vadd.f32 %v2133_v28, %v1983_v47 }
 0xb7a   : > { %v2272_v58 = vpop.f32.mrf.mxu1 }
 0xb7b   : > { %v1991_v59 = vsel %vm548_vm0, %v1984_v57, 0.0 }
 0xb7c   : > { %1992 = vadd.xlane.f32.xlu1 %v1991_v59  ;;  %v1986_v60 = vpop.f32.mrf.mxu1 }
 0xb7e   : > { %v2273_v61 = vpop.f32.mrf.mxu1 }
 0xc05   : > { %v1993_v62 = vpop.xlane.xlu1 %1992 }
 0xc06   : > { %v1994_v63 = vmul.f32 0.03125, %v1993_v62 }
 0xc08   : > { %v1995_v1 = vsub.f32 %v1984_v57, %v1994_v63 }
 0xc0a   : > { %v1996_v2 = vmul.f32 %v1995_v1, %v1995_v1 }
 0xc0c   : > { %v1997_v3 = vsel %vm548_vm0, %v1996_v2, 0.0 }
 0xc0d   : > { %1998 = vadd.xlane.f32.xlu0 %v1997_v3 }
 0xc96   : > { %v1999_v4 = vpop.xlane.xlu0 %1998 }
 0xc97   : > { %v2000_v5 = vmul.f32 0.03125, %v1999_v4 }
 0xc99   : > { %v2001_v6 = vadd.f32 1e-05, %v2000_v5 }
 0xc9b   : > { %2363 = vrsqrt.f32 %v2001_v6 }
 0xca8   : > { %v2364_v7 = vpop.eup %2363 }
 0xca9   : > { %v2003_v10 = vmul.f32 %v2364_v7, %v1995_v1 }
 0xcab   : > { %v2010_v0 = vmul.f32 %v2142_v9, %v2003_v10 }
 0xcad   : > { %v2017_v11 = vadd.f32 %v2143_v55, %v2010_v0 }
 0xcaf   : > { %v2018_v12 = vadd.f32 %v2017_v11, %v2785_v53 }
 0xcb1   : > { %2019 = vst.msk [vmem:[%s539_s2] sm:$0xff] %vm548_vm0, %v2018_v12 }
 0xcb2   : > { %2378 = shalt.err (!%p2375_p3)
}
 0xcb3   : > { %s2379_s4 = scalar_lea.hbm %s2032_s6, 128  ;;  %s2383_s23 = scalar_lea.hbm %s2909_s17, 256 }
 0xcb4   : > { %p2380_p4 = scmp.ne.s32.totalorder %s2032_s6, %s2379_s4  ;;  %p2384_p9 = scmp.lt.s32.totalorder %s2032_s6, %s2909_s17 }
 0xcb5   : > { %p2385_p10 = scmp.lt.s32.totalorder %s2383_s23, %s2379_s4 }
 0xcb6   : > { %p2381_p7 = pnand %p2380_p4, %p2568_p5 }
 0xcb7   : > { %p2386_p11 = por %p2385_p10, %p2384_p9 }
 0xcb8   : > { %p2382_p8 = pneg %p2381_p7 }
 0xcba   : > { %p2387_p12 = pnand %p2386_p11, %p2382_p8 }
 0xcbc   : > { %2390 = shalt.err (!%p2387_p12)
}
 0xcbd   : > { %2274 = dma.vmem_to_hbm [thread:$0]  (%p2568_p5), %s2035_s3, 128, %s2032_s6, %s2021_s18  }
 0xcbe PF: > { %p2280_p13 = scmp.ge.s32.totalorder %s2425_s27, 2  ;;  %s2046_s21 = sand.u32 1, %s2413_s24  }
 0xcbf   : > { %s2047_s22 = scalar_lea.sflag [#allocation5], %s2046_s21 }
 0xcc0   : > { %p2277_p0 = pnand %p2280_p13, %p2572_p6 }
 0xcc2   : > { %p2278_p1 = pneg %p2277_p0 }
 0xcc4   : > { %2408 = dma.done.wait (%p2278_p1), %s2047_s22, 128  }
 0xcc5   : > { %2410 = vsyncadd (%p2278_p1), %s2047_s22, 4294967168  ;;  %s2927_s28 = sld [smem:[#allocation7_spill]]  ;;  %p27_p2 = scmp.ge.s32.totalorder %s2555_s0, 4  }
 0xcc6   : > { %s2928_s24 = smov %s2417_s25  ;;  %s2929_s25 = smov %s2421_s26 }
 0xcc7   : > { %s2931_s27 = smov %s2555_s0  ;;  %29 = sbr.rel (!%p27_p2) target bundleno = 11 (0xb), region = 123 }
 0xccb   : > { %s2930_s26 = smov %s2927_s28 }
 0xccc   :  { %2052 = vsyncpa [#allocation5], 1 }
 0xccd   :  { %2054 = vsyncpa [#allocation5 + $0x1], 1 }

// kernel: tpu_custom_call.1
= control target key start
LH: loop header
LB: loop body
LE: loop exit
PB: predicated region body
PF: predicated region fallthrough
CT: control target
= control target key end

     0   :  { %s2892_s0 = inlined_call_operand.vmem [shape: f32[2,8,32], index: 0, kind: input, shape index: {}]   ;;  %s2893_s1 = inlined_call_operand.vmem [shape: f32[1,32], index: 1, kind: input, shape index: {}]   ;;  %s2894_s2 = inlined_call_operand.vmem [shape: f32[1,32], index: 2, kind: input, shape index: {}]   ;;  %s2895_s3 = inlined_call_operand.vmem [shape: bf16[32,96], index: 3, kind: input, shape index: {}]   ;;  %s2896_s4 = inlined_call_operand.vmem [shape: f32[1,96], index: 4, kind: input, shape index: {}]   ;;  %s2897_s5 = inlined_call_operand.vmem [shape: bf16[32,32], index: 5, kind: input, shape index: {}]   ;;  %s2898_s6 = inlined_call_operand.vmem [shape: f32[1,32], index: 6, kind: input, shape index: {}]   ;;  %s2899_s7 = inlined_call_operand.vmem [shape: f32[1,32], index: 7, kind: input, shape index: {}]   ;;  %s2900_s8 = inlined_call_operand.vmem [shape: f32[1,32], index: 8, kind: input, shape index: {}]   ;;  %s2901_s9 = inlined_call_operand.vmem [shape: bf16[32,128], index: 9, kind: input, shape index: {}]   ;;  %s2902_s10 = inlined_call_operand.vmem [shape: f32[1,128], index: 10, kind: input, shape index: {}]   ;;  %s2903_s11 = inlined_call_operand.vmem [shape: f32[1,128], index: 11, kind: input, shape index: {}]   ;;  %s2904_s12 = inlined_call_operand.vmem [shape: f32[1,128], index: 12, kind: input, shape index: {}]   ;;  %s2905_s13 = inlined_call_operand.vmem [shape: bf16[128,32], index: 13, kind: input, shape index: {}]   ;;  %s2906_s14 = inlined_call_operand.vmem [shape: f32[1,32], index: 14, kind: input, shape index: {}]   ;;  %s2907_s15 = inlined_call_operand.vmem [shape: f32[1,32], index: 15, kind: input, shape index: {}]   ;;  %s2908_s16 = inlined_call_operand.vmem [shape: f32[1,32], index: 16, kind: input, shape index: {}]   ;;  %s2909_s17 = inlined_call_operand.hbm [shape: f32[2,8,32], index: 17, kind: output, shape index: {}]  }
   0x1   :  { %2910 = sst [smem:[#allocation8_spill]] %s2892_s0 }
   0x2   :  { %2911 = sst [smem:[#allocation9_spill]] %s2893_s1 }
   0x3   :  { %2912 = sst [smem:[#allocation10_spill]] %s2894_s2 }
   0x4   :  { %2913 = sst [smem:[#allocation11_spill]] %s2895_s3 }
   0x5   :  { %2914 = sst [smem:[#allocation12_spill]] %s2896_s4 }
   0x6   :  { %2915 = sst [smem:[#allocation13_spill]] %s2897_s5 }
   0x7   :  { %2916 = sst [smem:[#allocation14_spill]] %s2898_s6 }
   0x8   :  { %22 = vsyncpa [#allocation5], 0 }
   0x9   :  { %24 = vsyncpa [#allocation5 + $0x1], 0  ;;  %s2530_s24 = smov 0   ;;  %s2532_s25 = smov 0  }
   0xa   :  { %s2534_s26 = smov 0   ;;  %s2536_s27 = smov 0  }
   0xb LB: > { %s2551_s28 = sadd.s32 4294967295, %s2425_s27   ;;  %s2093_s29 = sadd.s32 4294967294, %s2425_s27   ;;  %s2425_s27 = sphi %s2536_s27, %s2931_s27   ;;  %s2421_s26 = sphi %s2534_s26, %s2930_s26   ;;  %s2417_s25 = sphi %s2532_s25, %s2929_s25   ;;  %s2413_s24 = sphi %s2530_s24, %s2928_s24  }
   0xc   : > { %s2555_s0 = sadd.s32 1, %s2425_s27   ;;  %s399_s30 = sadd.s32 1, %s2421_s26 }
   0xd   : > { %s396_s18 = ssub.s32 %s2425_s27, %s2555_s0  ;;  %p409_p0 = scmp.ne.s32.totalorder %s2421_s26, %s2417_s25 }
   0xe   : > { %p397_p1 = scmp.eq.s32.totalorder %s396_s18, 0  ;;  %p410_p2 = scmp.eq.s32.totalorder %s2551_s28, 1 }
   0xf   : > { %p415_p3 = scmp.ne.s32.totalorder %s2417_s25, %s2413_s24  ;;  %p416_p4 = scmp.eq.s32.totalorder %s2093_s29, 1 }
  0x10   : > { %s2566_s19 = scalar_select %p397_p1, %s2421_s26, %s399_s30  }
  0x11   : > { %p2568_p5 = por %p410_p2, %p409_p0  ;;  %p2572_p6 = por %p416_p4, %p415_p3 }
  0x12   : > { %2917 = sst [smem:[#allocation7_spill]] %s2566_s19  ;;  %p2096_p7 = scmp.ge.s32.totalorder %s2425_s27, 1 }
  0x13   : > { %p489_p8 = scmp.lt.s32.totalorder %s2425_s27, 3 }
  0x15   : > { %p490_p9 = pnand %p2096_p7, %p489_p8 }
  0x16   : > { %p540_p10 = scmp.lt.s32.totalorder (!%p490_p9), %s2551_s28, 1  ;;  %s2920_s30 = sld [smem:[#allocation8_spill]] (!%p490_p9) }
  0x17   : > { %493 = sbr.rel (%p490_p9) target bundleno = 3262 (0xcbe), region = 88  ;;  %s2921_s3 = sld [smem:[#allocation11_spill]] (!%p490_p9) }
  0x18   : > { %s2923_s2 = sld [smem:[#allocation10_spill]] (!%p490_p9)  ;;  %s2429_s19 = smov (!%p490_p9), 104  }
  0x19   : > { %s2924_s4 = sld [smem:[#allocation12_spill]] (!%p490_p9)  ;;  %s2430_s29 = smov (!%p490_p9), 120  }
  0x1a   : > { %s2925_s5 = sld [smem:[#allocation13_spill]] (!%p490_p9) }
  0x1b   : > { %s2926_s6 = sld [smem:[#allocation14_spill]] (!%p490_p9) }
  0x1c   : > { %s541_s21 = scalar_select %p540_p10, %s2551_s28, 1  ;;  %vm548_vm0 = vcmask 261120   ;;  %v2427_v8 = vmov 0.0   ;;  %vm2428_vm1 = vmmov 0   ;;  %v2433_v31 = vmov 1983009808  }
  0x1d   : > { %v2325_v7 = vld [vmem:[%s2921_s3 + $0x8] sm:$0xff]   ;;  %2182 = vmatprep.subr.bf16.mxu0 %v2427_v8  ;;  %2186 = vmatprep.mubr.msk.bf16.mxu0 %vm2428_vm1, %v2427_v8  ;;  %v2326_v9 = vld [vmem:[%s2921_s3] sm:$0xff]   ;;  %v667_v32 = vunpack.c.l.s4 %v2433_v31  ;;  %v669_v33 = vlaneseq  ;;  %v2434_v35 = vmov 1934713408   ;;  %vm1107_vm2 = vcmask 64512  }
  0x1e   : > { %s2098_s22 = sshll.u32 %s541_s21, 3  ;;  %2183 = vmatpush3.bf16.msra.mxu0 %v2325_v7  ;;  %2202 = vmatprep.subr.bf16.mxu1 %v2427_v8  ;;  %v2100_v16 = vld [vmem:[%s2923_s2] ss:$0 sm:$0xff]  ;;  %v699_v36 = vunpack.c.l.s4 %v2434_v35  ;;  %s2435_s21 = smov 64   ;;  %vm1343_vm3 = vcmask 1043456   ;;  %vm1674_vm4 = vcmask 130048  }
  0x1f   : > { %s543_s18 = scalar_lea.vmem %s2920_s30, %s2098_s22  ;;  %2184 = vmatprep.subr.bf16.mxu0 %v2427_v8  ;;  %2204 = vmatprep.mubr.msk.bf16.mxu1 %vm2428_vm1, %v2427_v8  ;;  %s2922_s30 = sld [smem:[#allocation9_spill]]  ;;  %v2101_v20 = vld [vmem:[%s2924_s4] ss:$0 sm:$0xff]  ;;  %v668_v37 = vunpack.c.0.s8 %v667_v32  ;;  %v670_v38 = vshrl.u32 %v669_v33, 7  ;;  %vm1676_vm5 = vcmask 195584  }
  0x20   : > { %v2583_v0 = vld [vmem:[%s543_s18] sm:$0xff]  ;;  %s2432_s18 = smov 96   ;;  %v700_v40 = vunpack.c.0.s8 %v699_v36  ;;  %s2439_s22 = smov [#allocation4]  }
  0x21   : > { %v549_v1 = vsel %vm548_vm0, %v2583_v0, 0.0  ;;  %v2632_v41 = vsub.s32 %v668_v37, %v670_v38 }
  0x22   : > { %550 = vadd.xlane.f32.xlu0 %v549_v1  ;;  %2185 = vmatpush3.bf16.msra.mxu0 %v2326_v9  ;;  %v2634_v47 = vsub.s32 %v700_v40, %v670_v38 }
  0x23   : > { %2190 = vmatprep.subr.bf16.mxu0 %v2427_v8 }
  0x25   : > { %v2099_v14 = vld [vmem:[%s2922_s30] ss:$0 sm:$0xff]  ;;  %s2431_s30 = smov 112  }
  0xab   : > { %v551_v2 = vpop.xlane.xlu0 %550 }
  0xac   : > { %v553_v3 = vmul.f32 0.03125, %v551_v2 }
  0xae   : > { %v554_v4 = vsub.f32 %v2583_v0, %v553_v3 }
  0xb0   : > { %v555_v5 = vmul.f32 %v554_v4, %v554_v4 }
  0xb2   : > { %v556_v6 = vsel %vm548_vm0, %v555_v5, 0.0 }
  0xb3   : > { %557 = vadd.xlane.f32.xlu0 %v556_v6 }
 0x13c   : > { %v558_v10 = vpop.xlane.xlu0 %557 }
 0x13d   : > { %v559_v11 = vmul.f32 0.03125, %v558_v10 }
 0x13f   : > { %v560_v12 = vadd.f32 1e-05, %v559_v11 }
 0x141   : > { %2339 = vrsqrt.f32 %v560_v12 }
 0x14e   : > { %v2340_v13 = vpop.eup %2339 }
 0x14f   : > { %v562_v15 = vmul.f32 %v2340_v13, %v554_v4 }
 0x151   : > { %v569_v17 = vmul.f32 %v2099_v14, %v562_v15 }
 0x153   : > { %v576_v18 = vadd.f32 %v2100_v16, %v569_v17 }
 0x155   : > { %v577_v19 = vpack.c.bf16 %v576_v18, %v576_v18 }
 0x157   : > { %2187 = vmatmul.mubr.msk.bf16.vlgmr.msra.gmra.mxu0 %vm548_vm0, %v577_v19 }
 0x158   : > { %2192 = vmatprep.mubr.msk.bf16.mxu0 %vm2428_vm1, %v2427_v8 }
 0x217   : > { %v638_v21 = vpop.f32.mrf.mxu0 }
 0x218   : > { %v2615_v22 = vadd.f32 %v2101_v20, %v638_v21 }
 0x219   : > { %v2188_v23 = vpop.f32.mrf.mxu0 }
 0x21a   : > { %644 = vst.msk [vmem:[#allocation2] sm:$0xff] %vm548_vm0, %v2615_v22  ;;  %650 = vrot.lane.b32.xlu0 %v2615_v22, %s2429_s19  ;;  %646 = vrot.lane.b32.xlu1 %v2615_v22, %s2430_s29 }
 0x21b   : > { %v641_v24 = vpop.f32.mrf.mxu0 }
 0x21d   : > { %v2189_v25 = vpop.f32.mrf.mxu0 }
 0x21e   : > { %648 = vrot.lane.b32.xlu1 %v2615_v22, %s2431_s30 }
 0x221   : > { %v956_v26 = vld [vmem:[#allocation2] sm:$0xff] }
 0x222   : > { %652 = vrot.lane.b32.xlu1 %v2615_v22, %s2432_s18  ;;  %964 = vrot.lane.b32.xlu0 %v956_v26, %s2429_s19  ;;  %s2145_s19 = sshll.u32 %s2551_s28, 7  ;;  %s2369_s28 = sshll.u32 %s2439_s22, 4  ;;  %s2370_s28 = int_to_ptr.vmem [resolvable:$false] %s2369_s28 }
 0x28c   : > { %v2623_v27 = vpop.permute.xlu1 %646  ;;  %v2629_v29 = vpop.permute.xlu0 %650 }
 0x28d   : > { %654 = vrot.lane.b32.xlu1 %v2623_v27, %s2432_s18 }
 0x290   : > { %v2626_v28 = vpop.permute.xlu1 %648 }
 0x291   : > { %656 = vrot.lane.b32.xlu1 %v2626_v28, %s2432_s18 }
 0x294   : > { %v653_v30 = vpop.permute.xlu1 %652  ;;  %v965_v57 = vpop.permute.xlu0 %964 }
 0x295   : > { %658 = vrot.lane.b32.xlu1 %v2629_v29, %s2432_s18  ;;  %s2437_s18 = smov 8  }
 0x299   : > { %958 = vrot.lane.b32.xlu1 %v956_v26, %s2430_s29  ;;  %s537_s29 = sand.u32 1, %s2417_s25  }
 0x29d   : > { %961 = vrot.lane.b32.xlu1 %v956_v26, %s2431_s30  ;;  %s2436_s30 = smov 16  }
 0x2ff   : > { %v655_v34 = vpop.permute.xlu1 %654 }
 0x303   : > { %v657_v39 = vpop.permute.xlu1 %656 }
 0x304   : > { %v664_v42 = vcombine.low %v653_v30, %v657_v39  ;;  %v665_v43 = vcombine.high %v653_v30, %v657_v39 }
 0x306   : > { %v672_v48 = vrot.slane %v664_v42, %v2632_v41  ;;  %v679_v49 = vrot.slane %v665_v43, %v2632_v41 }
 0x307   : > { %v659_v44 = vpop.permute.xlu1 %658 }
 0x308   : > { %v680_v45 = vcombine.low %v655_v34, %v659_v44  ;;  %v681_v46 = vcombine.high %v655_v34, %v659_v44 }
 0x30a   : > { %v688_v50 = vrot.slane %v680_v45, %v2632_v41  ;;  %v695_v51 = vrot.slane %v681_v46, %v2632_v41 }
 0x30b   : > { %v959_v52 = vpop.permute.xlu1 %958 }
 0x30c   : > { %v696_v53 = vcombine.low %v672_v48, %v688_v50  ;;  %v697_v54 = vcombine.high %v672_v48, %v688_v50  ;;  %v712_v55 = vcombine.low %v679_v49, %v695_v51  ;;  %v713_v56 = vcombine.high %v679_v49, %v695_v51 }
 0x30d   : > { %v983_v62 = vcombine.low %v959_v52, %v965_v57  ;;  %v984_v63 = vcombine.high %v959_v52, %v965_v57 }
 0x30e   : > { %v704_v58 = vrot.slane %v696_v53, %v2634_v47  ;;  %v711_v59 = vrot.slane %v697_v54, %v2634_v47  ;;  %v720_v60 = vrot.slane %v712_v55, %v2634_v47  ;;  %v727_v61 = vrot.slane %v713_v56, %v2634_v47 }
 0x30f   : > { %v962_v1 = vpop.permute.xlu1 %961  ;;  %v991_v13 = vrot.slane %v983_v62, %v2632_v41  ;;  %v998_v14 = vrot.slane %v984_v63, %v2632_v41 }
 0x310   : > { %v732_v2 = vcombine.low %v704_v58, %v711_v59  ;;  %v2105_v3 = vcombine.high %v704_v58, %v711_v59  ;;  %v748_v4 = vcombine.low %v720_v60, %v727_v61  ;;  %v2106_v5 = vcombine.high %v720_v60, %v727_v61 }
 0x311   : > { %v967_v6 = vcombine.low %v956_v26, %v962_v1  ;;  %v968_v7 = vcombine.high %v956_v26, %v962_v1 }
 0x312   : > { %v739_v9 = vrot.slane %v732_v2, %v2632_v41  ;;  %v747_v10 = vrot.slane %v2105_v3, %v2632_v41  ;;  %v755_v11 = vrot.slane %v748_v4, %v2632_v41  ;;  %v763_v12 = vrot.slane %v2106_v5, %v2632_v41 }
 0x313   : > { %v975_v15 = vrot.slane %v967_v6, %v2632_v41  ;;  %v982_v16 = vrot.slane %v968_v7, %v2632_v41 }
 0x314   : > { %v764_v17 = vcombine.low %v739_v9, %v747_v10  ;;  %v780_v18 = vcombine.low %v755_v11, %v763_v12  ;;  %v765_v19 = vcombine.high %v739_v9, %v747_v10  ;;  %v781_v20 = vcombine.high %v755_v11, %v763_v12 }
 0x315   : > { %v999_v21 = vcombine.low %v975_v15, %v991_v13  ;;  %v1000_v23 = vcombine.high %v975_v15, %v991_v13  ;;  %v1015_v24 = vcombine.low %v982_v16, %v998_v14  ;;  %v1016_v25 = vcombine.high %v982_v16, %v998_v14 }
 0x316   : > { %v772_v26 = vrot.slane %v764_v17, %v2634_v47  ;;  %v788_v30 = vrot.slane %v780_v18, %v2634_v47  ;;  %v779_v31 = vrot.slane %v765_v19, %v2634_v47  ;;  %v795_v32 = vrot.slane %v781_v20, %v2634_v47 }
 0x317   : > { %v1007_v33 = vrot.slane %v999_v21, %v2634_v47  ;;  %v1014_v34 = vrot.slane %v1000_v23, %v2634_v47  ;;  %v1023_v35 = vrot.slane %v1015_v24, %v2634_v47  ;;  %v1030_v36 = vrot.slane %v1016_v25, %v2634_v47 }
 0x318   : > { %v796_v37 = vcombine.low %v772_v26, %v788_v30  ;;  %v798_v38 = vcombine.low %v779_v31, %v795_v32  ;;  %v797_v53 = vcombine.high %v772_v26, %v788_v30  ;;  %v799_v5 = vcombine.high %v779_v31, %v795_v32 }
 0x319   : > { %v1035_v39 = vcombine.low %v1007_v33, %v1014_v34  ;;  %v2109_v40 = vcombine.high %v1007_v33, %v1014_v34  ;;  %v1051_v42 = vcombine.low %v1023_v35, %v1030_v36  ;;  %v2110_v43 = vcombine.high %v1023_v35, %v1030_v36 }
 0x31a   : > { %v800_v44 = vpack.c.bf16 %v796_v37, %v796_v37  ;;  %v802_v45 = vpack.c.bf16 %v798_v38, %v798_v38  ;;  %v801_v63 = vpack.c.bf16 %v797_v53, %v797_v53  ;;  %v803_v7 = vpack.c.bf16 %v799_v5, %v799_v5 }
 0x31b   : > { %v1042_v46 = vrot.slane %v1035_v39, %v2632_v41  ;;  %v1050_v48 = vrot.slane %v2109_v40, %v2632_v41  ;;  %v1058_v49 = vrot.slane %v1051_v42, %v2632_v41  ;;  %v1066_v50 = vrot.slane %v2110_v43, %v2632_v41 }
 0x31c   : > { %v1112_v51 = vsel %vm1107_vm2, %v800_v44, 0  ;;  %v1204_v52 = vsel %vm1107_vm2, %v802_v45, 0  ;;  %v1158_v4 = vsel %vm1107_vm2, %v801_v63, 0  ;;  %v1250_v10 = vsel %vm1107_vm2, %v803_v7, 0 }
 0x31d   : > { %v1067_v54 = vcombine.low %v1042_v46, %v1050_v48  ;;  %v1083_v55 = vcombine.low %v1058_v49, %v1066_v50  ;;  %2191 = vmatpush3.bf16.xpose.msra.mxu0 %v1112_v51  ;;  %2203 = vmatpush3.bf16.xpose.msra.mxu1 %v1204_v52  ;;  %v1068_v56 = vcombine.high %v1042_v46, %v1050_v48 }
 0x31e   : > { %2196 = vmatprep.subr.bf16.mxu0 %v2427_v8  ;;  %v1084_v57 = vcombine.high %v1058_v49, %v1066_v50  ;;  %2214 = vmatprep.subr.bf16.mxu1 %v2427_v8 }
 0x31f   : > { %v1075_v58 = vrot.slane %v1067_v54, %v2634_v47  ;;  %v1091_v59 = vrot.slane %v1083_v55, %v2634_v47  ;;  %v1082_v60 = vrot.slane %v1068_v56, %v2634_v47 }
 0x320   : > { %v1098_v61 = vrot.slane %v1084_v57, %v2634_v47 }
 0x321   : > { %v1099_v62 = vcombine.low %v1075_v58, %v1091_v59  ;;  %v1100_v6 = vcombine.high %v1075_v58, %v1091_v59 }
 0x322   : > { %v1101_v1 = vcombine.low %v1082_v60, %v1098_v61  ;;  %v1102_v11 = vcombine.high %v1082_v60, %v1098_v61 }
 0x323   : > { %v1103_v2 = vpack.c.bf16 %v1099_v62, %v1099_v62  ;;  %v1104_v9 = vpack.c.bf16 %v1100_v6, %v1100_v6 }
 0x324   : > { %v1105_v3 = vpack.c.bf16 %v1101_v1, %v1101_v1  ;;  %v1106_v12 = vpack.c.bf16 %v1102_v11, %v1102_v11 }
 0x325   : > { %2193 = vmatmul.mubr.msk.bf16.vlgmr.msra.gmra.mxu0 %vm1107_vm2, %v1103_v2 }
 0x326   : > { %2205 = vmatmul.mubr.msk.bf16.vlgmr.msra.gmra.mxu1 %vm1107_vm2, %v1105_v3  ;;  %2197 = vmatpush3.bf16.xpose.msra.mxu0 %v1158_v4 }
 0x327   : > { %2198 = vmatprep.mubr.msk.bf16.mxu0 %vm2428_vm1, %v2427_v8  ;;  %2208 = vmatprep.subr.bf16.mxu0 %v2427_v8 }
 0x328   : > { %2216 = vmatprep.mubr.msk.bf16.mxu1 %vm2428_vm1, %v2427_v8 }
 0x32d   : > { %2199 = vmatmul.mubr.msk.bf16.vlgmr.msra.gmra.mxu0 %vm1107_vm2, %v1104_v9 }
 0x32e   : > { %2209 = vmatpush3.bf16.xpose.msra.mxu0 %v1250_v10  ;;  %2210 = vmatprep.mubr.msk.bf16.mxu0 %vm2428_vm1, %v2427_v8 }
 0x32f   : > { %2220 = vmatprep.subr.bf16.mxu0 %v2427_v8 }
 0x335   : > { %2211 = vmatmul.mubr.msk.bf16.vlgmr.msra.gmra.mxu0 %vm1107_vm2, %v1106_v12 }
 0x336   : > { %2222 = vmatprep.mubr.msk.bf16.mxu0 %vm2428_vm1, %v2427_v8 }
 0x3e5   : > { %v1148_v13 = vpop.f32.mrf.mxu0 }
 0x3e6   : > { %v1240_v14 = vpop.f32.mrf.mxu1  ;;  %v1292_v15 = vsel %vm1107_vm2, %v1148_v13, -inf }
 0x3e7   : > { %v1298_v16 = vsel %vm1107_vm2, %v1240_v14, -inf  ;;  %1293 = vmax.xlane.f32.xlu1 %v1292_v15  ;;  %v2194_v17 = vpop.f32.mrf.mxu0 }
 0x3e8   : > { %1299 = vmax.xlane.f32.xlu0 %v1298_v16  ;;  %v2206_v18 = vpop.f32.mrf.mxu1 }
 0x3e9   : > { %v1151_v19 = vpop.f32.mrf.mxu0 }
 0x3ea   : > { %v1243_v20 = vpop.f32.mrf.mxu1 }
 0x3eb   : > { %v2195_v21 = vpop.f32.mrf.mxu0 }
 0x3ec   : > { %v2207_v23 = vpop.f32.mrf.mxu1 }
 0x3ed   : > { %v1194_v24 = vpop.f32.mrf.mxu0 }
 0x3ee   : > { %v1295_v25 = vsel %vm1107_vm2, %v1194_v24, -inf }
 0x3ef   : > { %1296 = vmax.xlane.f32.xlu0 %v1295_v25  ;;  %v2200_v26 = vpop.f32.mrf.mxu0 }
 0x3f1   : > { %v1197_v30 = vpop.f32.mrf.mxu0 }
 0x3f3   : > { %v2201_v31 = vpop.f32.mrf.mxu0 }
 0x3f5   : > { %v1286_v32 = vpop.f32.mrf.mxu0 }
 0x3f6   : > { %v1301_v33 = vsel %vm1107_vm2, %v1286_v32, -inf }
 0x3f7   : > { %1302 = vmax.xlane.f32.xlu1 %v1301_v33  ;;  %v2212_v34 = vpop.f32.mrf.mxu0 }
 0x3f9   : > { %v1289_v35 = vpop.f32.mrf.mxu0 }
 0x3fb   : > { %v2213_v36 = vpop.f32.mrf.mxu0 }
 0x405   : > { %804 = vrot.lane.b32.xlu0 %v2615_v22, %s2435_s21 }
 0x408   : > { %806 = vrot.lane.b32.xlu1 %v2623_v27, %s2435_s21 }
 0x470   : > { %v1294_v37 = vpop.xlane.xlu1 %1293 }
 0x471   : > { %v1304_v38 = vsub.f32 %v1148_v13, %v1294_v37  ;;  %v1300_v40 = vpop.xlane.xlu0 %1299 }
 0x472   : > { %v1306_v51 = vsub.f32 %v1240_v14, %v1300_v40 }
 0x473   : > { %v1308_v39 = vmul.f32 1.442695, %v1304_v38 }
 0x474   : > { %v1312_v52 = vmul.f32 1.442695, %v1306_v51 }
 0x475   : > { %2341 = vpow2.f32 %v1308_v39 }
 0x478   : > { %v1297_v42 = vpop.xlane.xlu0 %1296 }
 0x479   : > { %v1305_v43 = vsub.f32 %v1194_v24, %v1297_v42 }
 0x47b   : > { %v1310_v44 = vmul.f32 1.442695, %v1305_v43 }
 0x47c   : > { %v805_v56 = vpop.permute.xlu0 %804 }
 0x47d   : > { %2343 = vpow2.f32 %v1310_v44 }
 0x480   : > { %v1303_v27 = vpop.xlane.xlu1 %1302 }
 0x481   : > { %v1307_v49 = vsub.f32 %v1286_v32, %v1303_v27 }
 0x482   : > { %v2694_v45 = vpop.eup %2341 }
 0x483   : > { %v1316_v46 = vsel %vm1107_vm2, %v2694_v45, 0.0  ;;  %v1314_v50 = vmul.f32 1.442695, %v1307_v49 }
 0x484   : > { %1317 = vadd.xlane.f32.xlu0 %v1316_v46  ;;  %v807_v57 = vpop.permute.xlu1 %806 }
 0x485   : > { %2345 = vpow2.f32 %v1314_v50 }
 0x486   : > { %2347 = vpow2.f32 %v1312_v52 }
 0x48a   : > { %v2698_v48 = vpop.eup %2343 }
 0x48b   : > { %v1319_v22 = vsel %vm1107_vm2, %v2698_v48, 0.0 }
 0x48c   : > { %1320 = vadd.xlane.f32.xlu1 %v1319_v22 }
 0x492   : > { %v2704_v53 = vpop.eup %2345 }
 0x493   : > { %v1325_v54 = vsel %vm1107_vm2, %v2704_v53, 0.0  ;;  %v2708_v55 = vpop.eup %2347 }
 0x49a   : > { %810 = vrot.lane.b32.xlu0 %v2629_v29, %s2435_s21  ;;  %v1322_v29 = vsel %vm1107_vm2, %v2708_v55, 0.0 }
 0x49d   : > { %808 = vrot.lane.b32.xlu1 %v2626_v28, %s2435_s21  ;;  %s2438_s21 = smov 24  }
 0x4b9   : > { %1326 = vadd.xlane.f32.xlu0 %v1325_v54 }
 0x4c1   : > { %1323 = vadd.xlane.f32.xlu1 %v1322_v29 }
 0x50d   : > { %v1318_v28 = vpop.xlane.xlu0 %1317 }
 0x50e   : > { %2349 = vrcp.f32 %v1318_v28 }
 0x511   : > { %v811_v58 = vpop.permute.xlu0 %810 }
 0x512   : > { %v832_v60 = vcombine.low %v807_v57, %v811_v58  ;;  %v833_v61 = vcombine.high %v807_v57, %v811_v58 }
 0x514   : > { %v840_v2 = vrot.slane %v832_v60, %v2632_v41  ;;  %v847_v3 = vrot.slane %v833_v61, %v2632_v41 }
 0x515   : > { %v1321_v59 = vpop.xlane.xlu1 %1320 }
 0x516   : > { %2351 = vrcp.f32 %v1321_v59 }
 0x519   : > { %v809_v62 = vpop.permute.xlu1 %808 }
 0x51a   : > { %v816_v63 = vcombine.low %v805_v56, %v809_v62  ;;  %v817_v1 = vcombine.high %v805_v56, %v809_v62 }
 0x51b   : > { %v2350_v31 = vpop.eup %2349 }
 0x51c   : > { %v824_v4 = vrot.slane %v816_v63, %v2632_v41  ;;  %v831_v5 = vrot.slane %v817_v1, %v2632_v41  ;;  %v1332_v44 = vmul.f32 %v2350_v31, %v2694_v45 }
 0x51e   : > { %v848_v6 = vcombine.low %v824_v4, %v840_v2  ;;  %v849_v7 = vcombine.high %v824_v4, %v840_v2  ;;  %v864_v9 = vcombine.low %v831_v5, %v847_v3  ;;  %v865_v10 = vcombine.high %v831_v5, %v847_v3 }
 0x51f   : > { %v1336_v51 = vpack.c.bf16 %v1332_v44, %v1332_v44 }
 0x520   : > { %v856_v11 = vrot.slane %v848_v6, %v2634_v47  ;;  %v863_v12 = vrot.slane %v849_v7, %v2634_v47  ;;  %v872_v13 = vrot.slane %v864_v9, %v2634_v47  ;;  %v879_v14 = vrot.slane %v865_v10, %v2634_v47 }
 0x522   : > { %v884_v15 = vcombine.low %v856_v11, %v863_v12  ;;  %v2107_v16 = vcombine.high %v856_v11, %v863_v12  ;;  %v900_v17 = vcombine.low %v872_v13, %v879_v14  ;;  %v2108_v18 = vcombine.high %v872_v13, %v879_v14 }
 0x523   : > { %v2352_v36 = vpop.eup %2351 }
 0x524   : > { %v891_v19 = vrot.slane %v884_v15, %v2632_v41  ;;  %v899_v20 = vrot.slane %v2107_v16, %v2632_v41  ;;  %v907_v21 = vrot.slane %v900_v17, %v2632_v41  ;;  %v915_v23 = vrot.slane %v2108_v18, %v2632_v41 }
 0x525   : > { %v1333_v46 = vmul.f32 %v2352_v36, %v2698_v48 }
 0x526   : > { %v916_v24 = vcombine.low %v891_v19, %v899_v20  ;;  %v932_v25 = vcombine.low %v907_v21, %v915_v23  ;;  %v917_v26 = vcombine.high %v891_v19, %v899_v20  ;;  %v933_v30 = vcombine.high %v907_v21, %v915_v23 }
 0x527   : > { %v1337_v52 = vpack.c.bf16 %v1333_v46, %v1333_v46 }
 0x528   : > { %v924_v32 = vrot.slane %v916_v24, %v2634_v47  ;;  %v940_v33 = vrot.slane %v932_v25, %v2634_v47  ;;  %v931_v34 = vrot.slane %v917_v26, %v2634_v47  ;;  %v947_v35 = vrot.slane %v933_v30, %v2634_v47 }
 0x52a   : > { %v948_v37 = vcombine.low %v924_v32, %v940_v33  ;;  %v949_v38 = vcombine.high %v924_v32, %v940_v33  ;;  %v950_v39 = vcombine.low %v931_v34, %v947_v35  ;;  %v951_v40 = vcombine.high %v931_v34, %v947_v35 }
 0x52c   : > { %v952_v42 = vpack.c.bf16 %v948_v37, %v948_v37  ;;  %v953_v43 = vpack.c.bf16 %v949_v38, %v949_v38  ;;  %v954_v49 = vpack.c.bf16 %v950_v39, %v950_v39  ;;  %v955_v50 = vpack.c.bf16 %v951_v40, %v951_v40 }
 0x52e   : > { %v1345_v22 = vsel %vm1343_vm3, %v952_v42, 0  ;;  %v1391_v27 = vsel %vm1343_vm3, %v953_v43, 0  ;;  %v1437_v45 = vsel %vm1343_vm3, %v954_v49, 0  ;;  %v1483_v48 = vsel %vm1343_vm3, %v955_v50, 0  ;;  %v2327_v42 = vld [vmem:[%s2925_s5 + $0x8] sm:$0xff]  }
 0x52f   : > { %2215 = vmatpush3.bf16.msra.mxu1 %v1345_v22  ;;  %2221 = vmatpush3.bf16.msra.mxu0 %v1391_v27  ;;  %v2328_v27 = vld [vmem:[%s2925_s5] sm:$0xff]  }
 0x530   : > { %2226 = vmatprep.subr.bf16.mxu1 %v2427_v8  ;;  %2232 = vmatprep.subr.bf16.mxu0 %v2427_v8 }
 0x532   : > { %2217 = vmatmul.mubr.msk.bf16.vlgmr.msra.gmra.mxu1 %vm1107_vm2, %v1336_v51  ;;  %2223 = vmatmul.mubr.msk.bf16.vlgmr.msra.gmra.mxu0 %vm1107_vm2, %v1337_v52 }
 0x533   : > { %2227 = vmatpush3.bf16.msra.mxu1 %v1437_v45  ;;  %2233 = vmatpush3.bf16.msra.mxu0 %v1483_v48 }
 0x534   : > { %2234 = vmatprep.mubr.msk.bf16.mxu0 %vm2428_vm1, %v2427_v8  ;;  %2228 = vmatprep.mubr.msk.bf16.mxu1 %vm2428_vm1, %v2427_v8 }
 0x535   : > { %2238 = vmatprep.subr.bf16.mxu1 %v2427_v8  ;;  %2246 = vmatprep.subr.bf16.mxu0 %v2427_v8 }
 0x542   : > { %v1327_v54 = vpop.xlane.xlu0 %1326 }
 0x543   : > { %2353 = vrcp.f32 %v1327_v54 }
 0x54a   : > { %v1324_v29 = vpop.xlane.xlu1 %1323 }
 0x54b   : > { %2355 = vrcp.f32 %v1324_v29 }
 0x550   : > { %v2354_v56 = vpop.eup %2353 }
 0x551   : > { %v1335_v28 = vmul.f32 %v2354_v56, %v2704_v53 }
 0x553   : > { %v1339_v57 = vpack.c.bf16 %v1335_v28, %v1335_v28 }
 0x555   : > { %2235 = vmatmul.mubr.msk.bf16.vlgmr.msra.gmra.mxu0 %vm1107_vm2, %v1339_v57 }
 0x556   : > { %2250 = vmatprep.mubr.msk.bf16.mxu0 %vm2428_vm1, %v2427_v8 }
 0x558   : > { %v2356_v58 = vpop.eup %2355 }
 0x559   : > { %v1334_v59 = vmul.f32 %v2356_v58, %v2708_v55 }
 0x55b   : > { %v1338_v60 = vpack.c.bf16 %v1334_v59, %v1334_v59 }
 0x55d   : > { %2229 = vmatmul.mubr.msk.bf16.vlgmr.msra.gmra.mxu1 %vm1107_vm2, %v1338_v60 }
 0x55e   : > { %2242 = vmatprep.mubr.msk.bf16.mxu1 %vm2428_vm1, %v2427_v8  ;;  %2239 = vmatpush3.bf16.msra.mxu1 %v2327_v42  ;;  %v2337_v42 = vld [vmem:[%s2905_s13 + $0x8] sm:$0xff]  }
 0x55f   : > { %2240 = vmatprep.subr.bf16.mxu1 %v2427_v8 }
 0x562   : > { %2241 = vmatpush3.bf16.msra.mxu1 %v2328_v27 }
 0x563   : > { %2254 = vmatprep.subr.bf16.mxu1 %v2427_v8 }
 0x5f2   : > { %v1381_v61 = vpop.f32.mrf.mxu1  ;;  %v1427_v62 = vpop.f32.mrf.mxu0 }
 0x5f4   : > { %v2218_v63 = vpop.f32.mrf.mxu1  ;;  %v2224_v1 = vpop.f32.mrf.mxu0 }
 0x5f6   : > { %v1384_v53 = vpop.f32.mrf.mxu1  ;;  %v1430_v2 = vpop.f32.mrf.mxu0 }
 0x5f8   : > { %v2219_v3 = vpop.f32.mrf.mxu1  ;;  %v2225_v4 = vpop.f32.mrf.mxu0 }
 0x615   : > { %v1519_v5 = vpop.f32.mrf.mxu0 }
 0x616   : > { %v1541_v10 = vcombine.low %v1427_v62, %v1519_v5  ;;  %v1542_v55 = vcombine.high %v1427_v62, %v1519_v5 }
 0x617   : > { %v2236_v6 = vpop.f32.mrf.mxu0 }
 0x618   : > { %v1549_v15 = vrot.slane %v1541_v10, %v2632_v41  ;;  %v1556_v16 = vrot.slane %v1542_v55, %v2632_v41  ;;  %v2329_v55 = vld [vmem:[%s2901_s9 + $0x8] sm:$0xff]  }
 0x619   : > { %v1522_v7 = vpop.f32.mrf.mxu0  ;;  %2247 = vmatpush3.bf16.msra.mxu0 %v2329_v55  ;;  %v2143_v55 = vld [vmem:[%s2908_s16] ss:$0 sm:$0xff] }
 0x61a   : > { %2248 = vmatprep.subr.bf16.mxu0 %v2427_v8 }
 0x61b   : > { %v2237_v9 = vpop.f32.mrf.mxu0 }
 0x61d   : > { %v1473_v11 = vpop.f32.mrf.mxu1 }
 0x61e   : > { %v1525_v12 = vcombine.low %v1381_v61, %v1473_v11  ;;  %v1526_v13 = vcombine.high %v1381_v61, %v1473_v11  ;;  %v2121_v61 = vld [vmem:[%s2926_s6] ss:$0 sm:$0xff]  ;;  %s2032_s6 = scalar_lea.hbm %s2909_s17, %s2145_s19 }
 0x61f   : > { %v2230_v14 = vpop.f32.mrf.mxu1 }
 0x620   : > { %v1533_v17 = vrot.slane %v1525_v12, %v2632_v41  ;;  %v1540_v18 = vrot.slane %v1526_v13, %v2632_v41 }
 0x621   : > { %v1476_v19 = vpop.f32.mrf.mxu1 }
 0x622   : > { %v1557_v20 = vcombine.low %v1533_v17, %v1549_v15  ;;  %v1558_v21 = vcombine.high %v1533_v17, %v1549_v15  ;;  %v1573_v23 = vcombine.low %v1540_v18, %v1556_v16  ;;  %v1574_v24 = vcombine.high %v1540_v18, %v1556_v16  ;;  %v2125_v15 = vld [vmem:[%s2899_s7] ss:$0 sm:$0xff] }
 0x623   : > { %v2231_v25 = vpop.f32.mrf.mxu1  ;;  %v2126_v17 = vld [vmem:[%s2900_s8] ss:$0 sm:$0xff] }
 0x624   : > { %v1565_v26 = vrot.slane %v1557_v20, %v2634_v47  ;;  %v1572_v30 = vrot.slane %v1558_v21, %v2634_v47  ;;  %v1581_v31 = vrot.slane %v1573_v23, %v2634_v47  ;;  %v1588_v32 = vrot.slane %v1574_v24, %v2634_v47  ;;  %v2127_v21 = vld [vmem:[%s2902_s10] ss:$0 sm:$0xff] }
 0x626   : > { %v1593_v33 = vcombine.low %v1565_v26, %v1572_v30  ;;  %v2119_v34 = vcombine.high %v1565_v26, %v1572_v30  ;;  %v1609_v35 = vcombine.low %v1581_v31, %v1588_v32  ;;  %v2120_v36 = vcombine.high %v1581_v31, %v1588_v32 }
 0x628   : > { %v1600_v37 = vrot.slane %v1593_v33, %v2632_v41  ;;  %v1608_v38 = vrot.slane %v2119_v34, %v2632_v41  ;;  %v1616_v39 = vrot.slane %v1609_v35, %v2632_v41  ;;  %v1624_v40 = vrot.slane %v2120_v36, %v2632_v41  ;;  %v2331_v35 = vld [vmem:[%s2905_s13 + $0x38] sm:$0xff]   ;;  %v2332_v36 = vld [vmem:[%s2905_s13 + $0x30] sm:$0xff]  }
 0x62a   : > { %v1626_v43 = vcombine.high %v1600_v37, %v1608_v38  ;;  %v1642_v44 = vcombine.high %v1616_v39, %v1624_v40  ;;  %v1625_v46 = vcombine.low %v1600_v37, %v1608_v38  ;;  %v1641_v22 = vcombine.low %v1616_v39, %v1624_v40  ;;  %v2333_v37 = vld [vmem:[%s2905_s13 + $0x28] sm:$0xff]   ;;  %v2334_v38 = vld [vmem:[%s2905_s13 + $0x20] sm:$0xff]   ;;  %v2335_v39 = vld [vmem:[%s2905_s13 + $0x18] sm:$0xff]  }
 0x62b   : > { %v2336_v40 = vld [vmem:[%s2905_s13 + $0x10] sm:$0xff]  }
 0x62c   : > { %v1640_v49 = vrot.slane %v1626_v43, %v2634_v47  ;;  %v1656_v50 = vrot.slane %v1642_v44, %v2634_v47  ;;  %v1633_v41 = vrot.slane %v1625_v46, %v2634_v47  ;;  %v1649_v51 = vrot.slane %v1641_v22, %v2634_v47  ;;  %v2338_v43 = vld [vmem:[%s2905_s13] sm:$0xff]  }
 0x62e   : > { %v1659_v52 = vcombine.low %v1640_v49, %v1656_v50  ;;  %v1658_v45 = vcombine.high %v1633_v41, %v1649_v51  ;;  %v1657_v48 = vcombine.low %v1633_v41, %v1649_v51  ;;  %v1660_v54 = vcombine.high %v1640_v49, %v1656_v50  ;;  %v2131_v49 = vld [vmem:[%s2903_s11] ss:$0 sm:$0xff] }
 0x62f   : > { %v2132_v41 = vld [vmem:[%s2904_s12] ss:$0 sm:$0xff] }
 0x630   : > { %1666 = vrot.lane.b32.xlu1 %v1659_v52, %s2436_s30  ;;  %1662 = vrot.lane.b32.xlu0 %v1658_v45, %s2437_s18  ;;  %s2097_s30 = sshll.u32 %s537_s29, 3  ;;  %s2021_s18 = scalar_lea.sflag [#allocation5], %s537_s29 }
 0x631   : > { %s539_s2 = scalar_lea.vmem [#allocation4], %s2097_s30  ;;  %s2371_s30 = scalar_lea.vmem %s2370_s28, 256 }
 0x632   : > { %s2034_s3 = sshll.u32 %s539_s2, 4  ;;  %s2035_s3 = int_to_ptr.vmem [resolvable:$true] %s2034_s3 }
 0x633   : > { %p2372_p0 = scmp.lt.s32.totalorder %s2035_s3, %s2370_s28 }
 0x634   : > { %1670 = vrot.lane.b32.xlu1 %v1660_v54, %s2438_s21  ;;  %s2365_s21 = scalar_lea.vmem %s2035_s3, 128 }
 0x635   : > { %p2366_p11 = scmp.ne.s32.totalorder %s2035_s3, %s2365_s21  ;;  %p2373_p1 = scmp.lt.s32.totalorder %s2371_s30, %s2365_s21 }
 0x637   : > { %p2367_p12 = pnand %p2366_p11, %p2568_p5  ;;  %p2374_p2 = por %p2373_p1, %p2372_p0 }
 0x639   : > { %p2368_p13 = pneg %p2367_p12 }
 0x63b   : > { %p2375_p3 = pnand %p2374_p2, %p2368_p13 }
 0x6a2   : > { %v1667_v29 = vpop.permute.xlu1 %1666  ;;  %v1663_v56 = vpop.permute.xlu0 %1662 }
 0x6a3   : > { %v1673_v28 = vsel %vm1107_vm2, %v1657_v48, %v1663_v56 }
 0x6a4   : > { %v1675_v57 = vsel %vm1674_vm4, %v1673_v28, %v1667_v29  ;;  %v2133_v28 = vld [vmem:[%s2906_s14] ss:$0 sm:$0xff] }
 0x6a6   : > { %v1671_v47 = vpop.permute.xlu1 %1670 }
 0x6a7   : > { %v1677_v58 = vsel %vm1676_vm5, %v1675_v57, %v1671_v47 }
 0x6a8   : > { %1678 = vst.msk [vmem:[#allocation3] sm:$0xff] %vm548_vm0, %v1677_v58 }
 0x6af   : > { %v1679_v59 = vld [vmem:[#allocation3] sm:$0xff] }
 0x6b0   : > { %v1680_v60 = vpack.c.bf16 %v1679_v59, %v1679_v59 }
 0x6b2   : > { %2243 = vmatmul.mubr.msk.bf16.vlgmr.msra.gmra.mxu1 %vm548_vm0, %v1680_v60 }
 0x6b3   : > { %2270 = vmatprep.mubr.msk.bf16.mxu1 %vm2428_vm1, %v2427_v8  ;;  %2255 = vmatpush3.bf16.msra.mxu1 %v2331_v35 }
 0x6b4   : > { %2256 = vmatprep.subr.bf16.mxu1 %v2427_v8 }
 0x6b7   : > { %2257 = vmatpush3.bf16.msra.mxu1 %v2332_v36 }
 0x6b8   : > { %2258 = vmatprep.subr.bf16.mxu1 %v2427_v8 }
 0x6bb   : > { %2259 = vmatpush3.bf16.msra.mxu1 %v2333_v37 }
 0x6bc   : > { %2260 = vmatprep.subr.bf16.mxu1 %v2427_v8 }
 0x6bf   : > { %2261 = vmatpush3.bf16.msra.mxu1 %v2334_v38 }
 0x6c0   : > { %2262 = vmatprep.subr.bf16.mxu1 %v2427_v8 }
 0x6c3   : > { %2263 = vmatpush3.bf16.msra.mxu1 %v2335_v39 }
 0x6c4   : > { %2264 = vmatprep.subr.bf16.mxu1 %v2427_v8 }
 0x6c7   : > { %2265 = vmatpush3.bf16.msra.mxu1 %v2336_v40 }
 0x6c8   : > { %2266 = vmatprep.subr.bf16.mxu1 %v2427_v8 }
 0x6cb   : > { %2267 = vmatpush3.bf16.msra.mxu1 %v2337_v42 }
 0x6cc   : > { %2268 = vmatprep.subr.bf16.mxu1 %v2427_v8 }
 0x6cf   : > { %2269 = vmatpush3.bf16.msra.mxu1 %v2338_v43 }
 0x772   : > { %v1741_v62 = vpop.f32.mrf.mxu1 }
 0x773   : > { %v1742_v63 = vadd.f32 %v2121_v61, %v1741_v62 }
 0x774   : > { %v2244_v1 = vpop.f32.mrf.mxu1 }
 0x775   : > { %v2785_v53 = vadd.f32 %v1742_v63, %v2583_v0  ;;  %v2330_v0 = vld [vmem:[%s2901_s9] sm:$0xff]  }
 0x776   : > { %v1744_v2 = vpop.f32.mrf.mxu1  ;;  %2249 = vmatpush3.bf16.msra.mxu0 %v2330_v0 }
 0x777   : > { %v1750_v3 = vsel %vm548_vm0, %v2785_v53, 0.0 }
 0x778   : > { %1751 = vadd.xlane.f32.xlu0 %v1750_v3  ;;  %v2245_v4 = vpop.f32.mrf.mxu1 }
 0x801   : > { %v1752_v5 = vpop.xlane.xlu0 %1751 }
 0x802   : > { %v1753_v6 = vmul.f32 0.03125, %v1752_v5 }
 0x804   : > { %v1754_v7 = vsub.f32 %v2785_v53, %v1753_v6 }
 0x806   : > { %v1755_v9 = vmul.f32 %v1754_v7, %v1754_v7 }
 0x808   : > { %v1756_v10 = vsel %vm548_vm0, %v1755_v9, 0.0  ;;  %v2142_v9 = vld [vmem:[%s2907_s15] ss:$0 sm:$0xff] }
 0x809   : > { %1757 = vadd.xlane.f32.xlu1 %v1756_v10 }
 0x892   : > { %v1758_v11 = vpop.xlane.xlu1 %1757 }
 0x893   : > { %v1759_v12 = vmul.f32 0.03125, %v1758_v11 }
 0x895   : > { %v1760_v13 = vadd.f32 1e-05, %v1759_v12 }
 0x897   : > { %2357 = vrsqrt.f32 %v1760_v13 }
 0x8a4   : > { %v2358_v14 = vpop.eup %2357 }
 0x8a5   : > { %v1762_v16 = vmul.f32 %v2358_v14, %v1754_v7 }
 0x8a7   : > { %v1769_v18 = vmul.f32 %v2125_v15, %v1762_v16 }
 0x8a9   : > { %v1776_v19 = vadd.f32 %v2126_v17, %v1769_v18 }
 0x8ab   : > { %v1777_v20 = vpack.c.bf16 %v1776_v19, %v1776_v19 }
 0x8ad   : > { %2251 = vmatmul.mubr.msk.bf16.vlgmr.msra.gmra.mxu0 %vm548_vm0, %v1777_v20 }
 0x96d   : > { %v1838_v23 = vpop.f32.mrf.mxu0 }
 0x96e   : > { %v1839_v24 = vadd.f32 %v2127_v21, %v1838_v23 }
 0x96f   : > { %v2252_v25 = vpop.f32.mrf.mxu0 }
 0x970   : > { %1846 = vadd.xlane.f32.xlu0 %v1839_v24 }
 0x971   : > { %v1841_v26 = vpop.f32.mrf.mxu0 }
 0x973   : > { %v2253_v30 = vpop.f32.mrf.mxu0 }
 0x9f9   : > { %v1847_v31 = vpop.xlane.xlu0 %1846 }
 0x9fa   : > { %v1849_v32 = vmul.f32 0.0078125, %v1847_v31 }
 0x9fc   : > { %v1850_v33 = vsub.f32 %v1839_v24, %v1849_v32 }
 0x9fe   : > { %v1851_v34 = vmul.f32 %v1850_v33, %v1850_v33 }
 0xa00   : > { %1852 = vadd.xlane.f32.xlu0 %v1851_v34 }
 0xa89   : > { %v1853_v44 = vpop.xlane.xlu0 %1852 }
 0xa8a   : > { %v1854_v46 = vmul.f32 0.0078125, %v1853_v44 }
 0xa8c   : > { %v1855_v22 = vadd.f32 1e-05, %v1854_v46 }
 0xa8e   : > { %2359 = vrsqrt.f32 %v1855_v22 }
 0xa9b   : > { %v2360_v27 = vpop.eup %2359 }
 0xa9c   : > { %v1857_v50 = vmul.f32 %v2360_v27, %v1850_v33 }
 0xa9e   : > { %v1864_v51 = vmul.f32 %v2131_v49, %v1857_v50 }
 0xaa0   : > { %v1871_v52 = vadd.f32 %v2132_v41, %v1864_v51 }
 0xaa2   : > { %v1873_v45 = vmul.f32 0.70710677, %v1871_v52  ;;  %v1872_v48 = vmul.f32 0.5, %v1871_v52 }
 0xaa4   : > { %2361 = verf.f32 %v1873_v45 }
 0xab1   : > { %v2362_v8 = vpop.eup %2361 }
 0xab2   : > { %v1875_v54 = vadd.f32 1.0, %v2362_v8 }
 0xab4   : > { %v1876_v29 = vmul.f32 %v1875_v54, %v1872_v48 }
 0xab6   : > { %v1877_v56 = vpack.c.bf16 %v1876_v29, %v1876_v29 }
 0xab8   : > { %2271 = vmatmul.mubr.bf16.vlgmr.msra.gmra.mxu1 %v1877_v56 }
 0xb78   : > { %v1983_v47 = vpop.f32.mrf.mxu1 }
 0xb79   : > { %v1984_v57 = vadd.f32 %v2133_v28, %v1983_v47 }
 0xb7a   : > { %v2272_v58 = vpop.f32.mrf.mxu1 }
 0xb7b   : > { %v1991_v59 = vsel %vm548_vm0, %v1984_v57, 0.0 }
 0xb7c   : > { %1992 = vadd.xlane.f32.xlu1 %v1991_v59  ;;  %v1986_v60 = vpop.f32.mrf.mxu1 }
 0xb7e   : > { %v2273_v61 = vpop.f32.mrf.mxu1 }
 0xc05   : > { %v1993_v62 = vpop.xlane.xlu1 %1992 }
 0xc06   : > { %v1994_v63 = vmul.f32 0.03125, %v1993_v62 }
 0xc08   : > { %v1995_v1 = vsub.f32 %v1984_v57, %v1994_v63 }
 0xc0a   : > { %v1996_v2 = vmul.f32 %v1995_v1, %v1995_v1 }
 0xc0c   : > { %v1997_v3 = vsel %vm548_vm0, %v1996_v2, 0.0 }
 0xc0d   : > { %1998 = vadd.xlane.f32.xlu0 %v1997_v3 }
 0xc96   : > { %v1999_v4 = vpop.xlane.xlu0 %1998 }
 0xc97   : > { %v2000_v5 = vmul.f32 0.03125, %v1999_v4 }
 0xc99   : > { %v2001_v6 = vadd.f32 1e-05, %v2000_v5 }
 0xc9b   : > { %2363 = vrsqrt.f32 %v2001_v6 }
 0xca8   : > { %v2364_v7 = vpop.eup %2363 }
 0xca9   : > { %v2003_v10 = vmul.f32 %v2364_v7, %v1995_v1 }
 0xcab   : > { %v2010_v0 = vmul.f32 %v2142_v9, %v2003_v10 }
 0xcad   : > { %v2017_v11 = vadd.f32 %v2143_v55, %v2010_v0 }
 0xcaf   : > { %v2018_v12 = vadd.f32 %v2017_v11, %v2785_v53 }
 0xcb1   : > { %2019 = vst.msk [vmem:[%s539_s2] sm:$0xff] %vm548_vm0, %v2018_v12 }
 0xcb2   : > { %2378 = shalt.err (!%p2375_p3)
}
 0xcb3   : > { %s2379_s4 = scalar_lea.hbm %s2032_s6, 128  ;;  %s2383_s23 = scalar_lea.hbm %s2909_s17, 256 }
 0xcb4   : > { %p2380_p4 = scmp.ne.s32.totalorder %s2032_s6, %s2379_s4  ;;  %p2384_p9 = scmp.lt.s32.totalorder %s2032_s6, %s2909_s17 }
 0xcb5   : > { %p2385_p10 = scmp.lt.s32.totalorder %s2383_s23, %s2379_s4 }
 0xcb6   : > { %p2381_p7 = pnand %p2380_p4, %p2568_p5 }
 0xcb7   : > { %p2386_p11 = por %p2385_p10, %p2384_p9 }
 0xcb8   : > { %p2382_p8 = pneg %p2381_p7 }
 0xcba   : > { %p2387_p12 = pnand %p2386_p11, %p2382_p8 }
 0xcbc   : > { %2390 = shalt.err (!%p2387_p12)
}
 0xcbd   : > { %2274 = dma.vmem_to_hbm [thread:$0]  (%p2568_p5), %s2035_s3, 128, %s2032_s6, %s2021_s18  }
 0xcbe PF: > { %p2280_p13 = scmp.ge.s32.totalorder %s2425_s27, 2  ;;  %s2046_s21 = sand.u32 1, %s2413_s24  }
 0xcbf   : > { %s2047_s22 = scalar_lea.sflag [#allocation5], %s2046_s21 }
 0xcc0   : > { %p2277_p0 = pnand %p2280_p13, %p2572_p6 }
 0xcc2   : > { %p2278_p1 = pneg %p2277_p0 }
 0xcc4   : > { %2408 = dma.done.wait (%p2278_p1), %s2047_s22, 128  }
 0xcc5   : > { %2410 = vsyncadd (%p2278_p1), %s2047_s22, 4294967168  ;;  %s2927_s28 = sld [smem:[#allocation7_spill]]  ;;  %p27_p2 = scmp.ge.s32.totalorder %s2555_s0, 4  }
 0xcc6   : > { %s2928_s24 = smov %s2417_s25  ;;  %s2929_s25 = smov %s2421_s26 }
 0xcc7   : > { %s2931_s27 = smov %s2555_s0  ;;  %29 = sbr.rel (!%p27_p2) target bundleno = 11 (0xb), region = 123 }
 0xccb   : > { %s2930_s26 = smov %s2927_s28 }
 0xccc   :  { %2052 = vsyncpa [#allocation5], 1 }
 0xccd   :  { %2054 = vsyncpa [#allocation5 + $0x1], 1 }

</bundles_post_ra>
